<compile_context>
chip_gen: v5e
topology: v5e:2x2
jax: 0.10.0
libtpu: 0.0.40
codegen_flags: <defaults>
</compile_context>

<pallas_src>
import functools

import jax
import jax.numpy as jnp
from jax import lax
from jax.experimental import pallas as pl
from jax.experimental.pallas import tpu as pltpu


def _gelu(x):
    # tanh-approx GELU (lowers cleanly to VPU/EUP ops)
    return jax.nn.gelu(x, approximate=True)


def _vmem_capacity_bytes():
    try:
        return int(pltpu.get_tpu_info().vmem_capacity_bytes)
    except Exception:
        return 64 * 1024 * 1024  # size for the smallest-VMEM generation (v7x)


def _estimate_step_vmem_bytes(ti, L, H, out_bytes):
    """Conservative per-grid-step VMEM estimate (everything counted as live)."""
    f32, bf16 = 4, 2
    tile = ti * L * H
    halo_rows = (ti + 2) * L * H
    halo_full = (ti + 2) * (L + 2) * H
    b = 2 * (L + 2) * H * f32                  # row-projection block (double-buffered)
    b += 2 * L * H * f32                       # column-projection block
    b += 9 * H * H * bf16 + 4 * H * f32        # conv weight + biases
    b += halo_rows * f32                       # gelu'd table core (f32)
    b += halo_rows * bf16 + halo_full * bf16   # bf16 core + zero-column-padded halo
    b += tile * bf16                           # current conv tap slice
    b += 2 * tile * f32                        # conv accumulator + matmul result
    b += tile * f32                            # f32 interior slice for the mix
    b += 2 * tile * out_bytes                  # double-buffered output block
    return b


def _choose_row_tile(L, H, budget_bytes, out_bytes):
    """Largest row tile (multiple of 8 dividing L, or L itself) fitting the budget."""
    candidates = [ti for ti in range(8, L, 8) if L % ti == 0] + [L]
    fitting = [ti for ti in candidates
               if _estimate_step_vmem_bytes(ti, L, H, out_bytes) <= budget_bytes]
    return max(fitting) if fitting else min(candidates)


def table_encoder_kernel(a_ref, c_ref, b1_ref, wc_ref, bc_ref, out_ref):
    """One (batch, row-tile) grid step.

    a_ref  : [L+2, H]      f32  row projection, one zero apron row on each side
    c_ref  : [L, H]        f32  column projection
    b1_ref : [1, H]        f32  Seq2Mat bias
    wc_ref : [9H, H]       bf16 3x3 conv weight; tap (di, dj) -> rows [(3di+dj)H : +H)
    bc_ref : [1, H]        f32  conv bias
    out_ref: [1, TI, L, H]      mixed table rows for this tile
    """
    L, H = c_ref.shape
    TI = out_ref.shape[1]
    row_start = pl.multiple_of(pl.program_id(1) * TI, 8)

    # Row-projection window with a 1-row halo on each side: global rows
    # row_start-1 .. row_start+TI live at padded rows row_start .. row_start+TI+1,
    # so the dynamic slice start is sublane-aligned.
    a_halo = a_ref[pl.ds(row_start, TI + 2), :]                    # [TI+2, H] f32
    c = c_ref[...]                                                 # [L, H]   f32
    bias = b1_ref[0]                                               # [H]

    # ---- Seq2Mat table tile (with 1-row halo): gelu(a_i + c_j + b), f32 ------------
    table = _gelu(a_halo[:, None, :] + c[None, :, :] + bias[None, None, :])

    # Zero out-of-range halo rows (only hits the first / last row tile): cheap per-row
    # validity select instead of a full iota/compare/and mask over the whole halo.
    row_ids = lax.broadcasted_iota(jnp.int32, (TI + 2, H), 0) + (row_start - 1)
    row_ok = (row_ids >= 0) & (row_ids < L)                        # [TI+2, H]
    table = jnp.where(row_ok[:, None, :], table, 0.0)              # [TI+2, L, H] f32

    # bf16 halo with zero column borders (= the conv's zero padding).
    halo_bf = jnp.pad(table.astype(jnp.bfloat16), ((0, 0), (1, 1), (0, 0)))

    # ---- CNN: 9 accumulated tap matmuls (K = H), bf16 in, f32 accumulation ---------
    conv = jnp.zeros((TI * L, H), jnp.float32)
    for di in range(3):
        for dj in range(3):
            tap = lax.slice(halo_bf, (di, dj, 0), (di + TI, dj + L, H))   # [TI, L, H]
            w_tap = wc_ref[(3 * di + dj) * H:(3 * di + dj + 1) * H, :]    # [H, H] bf16
            conv = conv + jnp.dot(tap.reshape(TI * L, H), w_tap,
                                  preferred_element_type=jnp.float32)
    conv = _gelu(conv + bc_ref[0][None, :]).reshape(TI, L, H)

    # ---- Mix (f32 epilogue): interior rows only -------------------------------------
    table_int = lax.slice(table, (1, 0, 0), (TI + 1, L, H))               # [TI, L, H]
    out_ref[0] = (0.3 * table_int + 0.7 * conv).astype(out_ref.dtype)


@functools.partial(jax.jit, static_argnames=("row_tile", "out_dtype"))
def table_encoder(seq, mask, w1, w2, b1, wc, bc, *, row_tile=None,
                  out_dtype=jnp.float32):
    """seq: [B, L, H] float32; mask is accepted but unused (as in the reference forward)."""
    del mask  # not used by TableEncoder.forward
    B, L, H = seq.shape
    out_bytes = jnp.dtype(out_dtype).itemsize

    cap = _vmem_capacity_bytes()
    # Generation-aware tile budget: ~24 MiB on v7x (64 MiB VMEM), 48 MiB on v5e/v6e.
    budget = max(16 * 1024 * 1024, min(3 * cap // 8, 48 * 1024 * 1024))
    TI = row_tile if row_tile is not None else _choose_row_tile(L, H, budget, out_bytes)
    assert L % TI == 0, f"row tile {TI} must divide L={L}"
    if L // TI > 1:
        assert TI % 8 == 0, f"row tile {TI} must be a multiple of 8"

    # ---- Hoisted Seq2Mat projection: one fused bf16 XLA matmul per batch -----------
    w12 = jnp.concatenate([w1, w2], axis=1).astype(jnp.bfloat16)          # [H, 2H]
    proj = jnp.einsum("blh,hk->blk", seq.astype(jnp.bfloat16), w12,
                      preferred_element_type=jnp.float32)                 # [B, L, 2H]
    a_pad = jnp.pad(proj[:, :, :H], ((0, 0), (1, 1), (0, 0)))             # [B, L+2, H]
    c = proj[:, :, H:]                                                    # [B, L, H]

    wcf = wc.reshape(9 * H, H).astype(jnp.bfloat16)                       # [9H, H]
    b1_2d = b1.reshape(1, H).astype(jnp.float32)
    bc_2d = bc.reshape(1, H).astype(jnp.float32)

    est = _estimate_step_vmem_bytes(TI, L, H, out_bytes)
    upper = min(cap - 8 * 1024 * 1024, 112 * 1024 * 1024)  # never the full physical VMEM
    vmem_limit = int(min(upper, max(32 * 1024 * 1024, 2 * est)))

    grid_spec = pltpu.PrefetchScalarGridSpec(
        num_scalar_prefetch=0,
        grid=(B, L // TI),
        in_specs=[
            pl.BlockSpec((None, L + 2, H), lambda b, i: (b, 0, 0)),   # row proj (per batch)
            pl.BlockSpec((None, L, H), lambda b, i: (b, 0, 0)),       # col proj (per batch)
            pl.BlockSpec((1, H), lambda b, i: (0, 0)),                # Seq2Mat bias
            pl.BlockSpec((9 * H, H), lambda b, i: (0, 0)),            # conv weight
            pl.BlockSpec((1, H), lambda b, i: (0, 0)),                # conv bias
        ],
        out_specs=pl.BlockSpec((1, TI, L, H), lambda b, i: (b, i, 0, 0)),
    )

    return pl.pallas_call(
        table_encoder_kernel,
        out_shape=jax.ShapeDtypeStruct((B, L, L, H), out_dtype),
        grid_spec=grid_spec,
        compiler_params=pltpu.CompilerParams(
            dimension_semantics=("parallel", "parallel"),
            vmem_limit_bytes=vmem_limit,
        ),
    )(a_pad, c, b1_2d, wcf, bc_2d)


def table_encoder_ref(seq, w1, w2, b1, wc, bc):
    """Pure-JAX reference mirroring the kernel's numerics (bf16 matmuls, f32 accum)."""
    B, L, H = seq.shape
    sbf = seq.astype(jnp.bfloat16)
    a = jnp.einsum("blh,hk->blk", sbf, w1.astype(jnp.bfloat16),
                   preferred_element_type=jnp.float32)
    c = jnp.einsum("blh,hk->blk", sbf, w2.astype(jnp.bfloat16),
                   preferred_element_type=jnp.float32)
    table = _gelu(a[:, :, None, :] + c[:, None, :, :] + b1[None, None, None, :])
    padded = jnp.pad(table.astype(jnp.bfloat16), ((0, 0), (1, 1), (1, 1), (0, 0)))
    conv = jnp.zeros((B, L, L, H), jnp.float32)
    for di in range(3):
        for dj in range(3):
            tap = padded[:, di:di + L, dj:dj + L, :]
            conv = conv + jnp.einsum("bijc,co->bijo", tap,
                                     wc[di * 3 + dj].astype(jnp.bfloat16),
                                     preferred_element_type=jnp.float32)
    conv = _gelu(conv + bc[None, None, None, :])
    return 0.3 * table + 0.7 * conv


if __name__ == "__main__":
    B, L, H = 2, 8, 32  # batch, seq length, hidden

    key = jax.random.PRNGKey(0)
    k_seq, k_w1, k_w2, k_b1, k_wc, k_bc, k_seq2 = jax.random.split(key, 7)

    seq = jax.random.normal(k_seq, (B, L, H), dtype=jnp.float32)
    mask = jnp.ones((B, L), dtype=jnp.float32)  # accepted, unused (as in reference forward)

    # Seq2Mat: Linear(2H -> H) split into W1 (row token) and W2 (col token)
    scale_lin = 1.0 / jnp.sqrt(2.0 * H)
    w1 = jax.random.normal(k_w1, (H, H), dtype=jnp.float32) * scale_lin
    w2 = jax.random.normal(k_w2, (H, H), dtype=jnp.float32) * scale_lin
    b1 = jax.random.normal(k_b1, (H,), dtype=jnp.float32) * 0.01

    # CNN: Conv2d(H, H, kernel_size=3, padding=1), weights as [9, Cin, Cout]
    scale_conv = 1.0 / jnp.sqrt(9.0 * H)
    wc = jax.random.normal(k_wc, (9, H, H), dtype=jnp.float32) * scale_conv
    bc = jax.random.normal(k_bc, (H,), dtype=jnp.float32) * 0.01

    out = jax.block_until_ready(table_encoder(seq, mask, w1, w2, b1, wc, bc))
    ref = table_encoder_ref(seq, w1, w2, b1, wc, bc)
    assert out.shape == (B, L, L, H)
    assert jnp.allclose(out, ref, atol=5e-3, rtol=5e-3), "mismatch vs pure-JAX reference"

    # Second run exercises the multi-row-tile path (edge + interior halos, row masking).
    L2 = 16
    seq2 = jax.random.normal(k_seq2, (B, L2, H), dtype=jnp.float32)
    mask2 = jnp.ones((B, L2), dtype=jnp.float32)
    out2 = jax.block_until_ready(
        table_encoder(seq2, mask2, w1, w2, b1, wc, bc, row_tile=8))
    ref2 = table_encoder_ref(seq2, w1, w2, b1, wc, bc)
    assert out2.shape == (B, L2, L2, H)
    assert jnp.allclose(out2, ref2, atol=5e-3, rtol=5e-3), "mismatch on tiled path"

    print("KERNEL_OK")
</pallas_src>

<mosaic_0001>
module attributes {stable_mosaic.version = 11 : i64} {
  func.func @table_encoder_kernel(%arg0: i32, %arg1: i32, %arg2: memref<1x10x32xf32, #tpu.memory_space<vmem>>, %arg3: memref<1x8x32xf32, #tpu.memory_space<vmem>>, %arg4: memref<1x32xf32, #tpu.memory_space<vmem>>, %arg5: memref<288x32xbf16, #tpu.memory_space<vmem>>, %arg6: memref<1x32xf32, #tpu.memory_space<vmem>>, %arg7: memref<1x8x8x32xf32, #tpu.memory_space<vmem>>) attributes {dimension_semantics = [#tpu.dimension_semantics<parallel>, #tpu.dimension_semantics<parallel>], iteration_bounds = array<i64: 2, 1>, scalar_prefetch = 0 : i64, scratch_operands = 0 : i64, tpu.core_type = #tpu.core_type<tc>, window_params = [{transform_indices = @transform_0, window_bounds = array<i64: 1, 10, 32>}, {transform_indices = @transform_1, window_bounds = array<i64: 1, 8, 32>}, {pipeline_mode = #tpu.pipeline_mode<synchronous>, transform_indices = @transform_2, window_bounds = array<i64: 1, 32>}, {pipeline_mode = #tpu.pipeline_mode<synchronous>, transform_indices = @transform_3, window_bounds = array<i64: 288, 32>}, {pipeline_mode = #tpu.pipeline_mode<synchronous>, transform_indices = @transform_4, window_bounds = array<i64: 1, 32>}, {transform_indices = @transform_5, window_bounds = array<i64: 1, 8, 8, 32>}]} {
    %c8_i32 = arith.constant 8 : i32
    %0 = arith.muli %arg1, %c8_i32 : i32
    %1 = tpu.assume_multiple %0, 8 : i32
    %c0 = arith.constant 0 : index
    %2 = arith.index_cast %1 : i32 to index
    %c0_0 = arith.constant 0 : index
    %3 = vector.load %arg2[%c0, %2, %c0_0] : memref<1x10x32xf32, #tpu.memory_space<vmem>>, vector<1x10x32xf32>
    %4 = vector.shape_cast %3 : vector<1x10x32xf32> to vector<10x32xf32>
    %c0_1 = arith.constant 0 : index
    %c0_2 = arith.constant 0 : index
    %c0_3 = arith.constant 0 : index
    %5 = vector.load %arg3[%c0_1, %c0_2, %c0_3] : memref<1x8x32xf32, #tpu.memory_space<vmem>>, vector<1x8x32xf32>
    %6 = vector.shape_cast %5 : vector<1x8x32xf32> to vector<8x32xf32>
    %c0_4 = arith.constant 0 : index
    %c0_5 = arith.constant 0 : index
    %7 = vector.load %arg4[%c0_4, %c0_5] : memref<1x32xf32, #tpu.memory_space<vmem>>, vector<1x32xf32>
    %8 = vector.shape_cast %7 : vector<1x32xf32> to vector<32xf32>
    %9 = vector.shape_cast %4 : vector<10x32xf32> to vector<10x1x32xf32>
    %10 = vector.shape_cast %6 : vector<8x32xf32> to vector<1x8x32xf32>
    %11 = vector.broadcast %9 : vector<10x1x32xf32> to vector<10x8x32xf32>
    %12 = vector.broadcast %10 : vector<1x8x32xf32> to vector<10x8x32xf32>
    %13 = arith.addf %11, %12 : vector<10x8x32xf32>
    %14 = vector.shape_cast %8 : vector<32xf32> to vector<1x1x32xf32>
    %15 = vector.broadcast %14 : vector<1x1x32xf32> to vector<10x8x32xf32>
    %16 = arith.addf %13, %15 : vector<10x8x32xf32>
    %17 = arith.mulf %16, %16 : vector<10x8x32xf32>
    %18 = arith.mulf %16, %17 : vector<10x8x32xf32>
    %cst = arith.constant 4.471500e-02 : f32
    %19 = vector.broadcast %cst : f32 to vector<10x8x32xf32>
    %20 = arith.mulf %19, %18 : vector<10x8x32xf32>
    %21 = arith.addf %16, %20 : vector<10x8x32xf32>
    %cst_6 = arith.constant 0.797884583 : f32
    %22 = vector.broadcast %cst_6 : f32 to vector<10x8x32xf32>
    %23 = arith.mulf %22, %21 : vector<10x8x32xf32>
    %24 = math.tanh %23 : vector<10x8x32xf32>
    %cst_7 = arith.constant 1.000000e+00 : f32
    %25 = vector.broadcast %cst_7 : f32 to vector<10x8x32xf32>
    %26 = arith.addf %25, %24 : vector<10x8x32xf32>
    %cst_8 = arith.constant 5.000000e-01 : f32
    %27 = vector.broadcast %cst_8 : f32 to vector<10x8x32xf32>
    %28 = arith.mulf %27, %26 : vector<10x8x32xf32>
    %29 = arith.mulf %16, %28 : vector<10x8x32xf32>
    %30 = tpu.iota {dimensions = array<i32: 0>} : vector<10x32xi32>
    %c1_i32 = arith.constant 1 : i32
    %31 = arith.subi %1, %c1_i32 : i32
    %32 = vector.broadcast %31 : i32 to vector<10x32xi32>
    %33 = arith.addi %30, %32 : vector<10x32xi32>
    %c0_i32 = arith.constant 0 : i32
    %34 = vector.broadcast %c0_i32 : i32 to vector<10x32xi32>
    %35 = arith.cmpi sge, %33, %34 : vector<10x32xi32>
    %c8_i32_9 = arith.constant 8 : i32
    %36 = vector.broadcast %c8_i32_9 : i32 to vector<10x32xi32>
    %37 = arith.cmpi slt, %33, %36 : vector<10x32xi32>
    %38 = arith.andi %35, %37 : vector<10x32xi1>
    %39 = vector.shape_cast %38 : vector<10x32xi1> to vector<10x1x32xi1>
    %cst_10 = arith.constant 0.000000e+00 : f32
    %40 = vector.shape_cast %39 : vector<10x1x32xi1> to vector<10x1x32xi1>
    %41 = vector.broadcast %40 : vector<10x1x32xi1> to vector<10x8x32xi1>
    %42 = vector.broadcast %cst_10 : f32 to vector<10x8x32xf32>
    %43 = arith.select %41, %29, %42 : vector<10x8x32xi1>, vector<10x8x32xf32>
    %44 = arith.truncf %43 : vector<10x8x32xf32> to vector<10x8x32xbf16>
    %c0_i32_11 = arith.constant 0 : i32
    %45 = arith.sitofp %c0_i32_11 : i32 to bf16
    %46 = vector.broadcast %45 : bf16 to vector<10x1x32xbf16>
    %47 = tpu.concatenate %46, %44 in 1 : vector<10x1x32xbf16>, vector<10x8x32xbf16> -> vector<10x9x32xbf16>
    %48 = vector.broadcast %45 : bf16 to vector<10x1x32xbf16>
    %49 = tpu.concatenate %47, %48 in 1 : vector<10x9x32xbf16>, vector<10x1x32xbf16> -> vector<10x10x32xbf16>
    %cst_12 = arith.constant 0.000000e+00 : f32
    %50 = vector.broadcast %cst_12 : f32 to vector<64x32xf32>
    %51 = vector.extract_strided_slice %49 {offsets = [0, 0, 0], sizes = [8, 8, 32], strides = [1, 1, 1]} : vector<10x10x32xbf16> to vector<8x8x32xbf16>
    %c0_13 = arith.constant 0 : index
    %c0_14 = arith.constant 0 : index
    %52 = vector.load %arg5[%c0_13, %c0_14] : memref<288x32xbf16, #tpu.memory_space<vmem>>, vector<32x32xbf16>
    %53 = vector.shape_cast %51 : vector<8x8x32xbf16> to vector<64x32xbf16>
    %cst_15 = arith.constant dense<0.000000e+00> : vector<64x32xf32>
    %54 = tpu.matmul %53, %52, %cst_15 {dimension_numbers = #tpu.dot_dimension_numbers<[1], [0], [0], [1], [0, 0, 1, 1], [], []>} : vector<64x32xbf16>, vector<32x32xbf16>, vector<64x32xf32> -> vector<64x32xf32>
    %55 = arith.addf %50, %54 : vector<64x32xf32>
    %56 = vector.extract_strided_slice %49 {offsets = [0, 1, 0], sizes = [8, 8, 32], strides = [1, 1, 1]} : vector<10x10x32xbf16> to vector<8x8x32xbf16>
    %c32 = arith.constant 32 : index
    %c0_16 = arith.constant 0 : index
    %57 = vector.load %arg5[%c32, %c0_16] : memref<288x32xbf16, #tpu.memory_space<vmem>>, vector<32x32xbf16>
    %58 = vector.shape_cast %56 : vector<8x8x32xbf16> to vector<64x32xbf16>
    %cst_17 = arith.constant dense<0.000000e+00> : vector<64x32xf32>
    %59 = tpu.matmul %58, %57, %cst_17 {dimension_numbers = #tpu.dot_dimension_numbers<[1], [0], [0], [1], [0, 0, 1, 1], [], []>} : vector<64x32xbf16>, vector<32x32xbf16>, vector<64x32xf32> -> vector<64x32xf32>
    %60 = arith.addf %55, %59 : vector<64x32xf32>
    %61 = vector.extract_strided_slice %49 {offsets = [0, 2, 0], sizes = [8, 8, 32], strides = [1, 1, 1]} : vector<10x10x32xbf16> to vector<8x8x32xbf16>
    %c64 = arith.constant 64 : index
    %c0_18 = arith.constant 0 : index
    %62 = vector.load %arg5[%c64, %c0_18] : memref<288x32xbf16, #tpu.memory_space<vmem>>, vector<32x32xbf16>
    %63 = vector.shape_cast %61 : vector<8x8x32xbf16> to vector<64x32xbf16>
    %cst_19 = arith.constant dense<0.000000e+00> : vector<64x32xf32>
    %64 = tpu.matmul %63, %62, %cst_19 {dimension_numbers = #tpu.dot_dimension_numbers<[1], [0], [0], [1], [0, 0, 1, 1], [], []>} : vector<64x32xbf16>, vector<32x32xbf16>, vector<64x32xf32> -> vector<64x32xf32>
    %65 = arith.addf %60, %64 : vector<64x32xf32>
    %66 = vector.extract_strided_slice %49 {offsets = [1, 0, 0], sizes = [8, 8, 32], strides = [1, 1, 1]} : vector<10x10x32xbf16> to vector<8x8x32xbf16>
    %c96 = arith.constant 96 : index
    %c0_20 = arith.constant 0 : index
    %67 = vector.load %arg5[%c96, %c0_20] : memref<288x32xbf16, #tpu.memory_space<vmem>>, vector<32x32xbf16>
    %68 = vector.shape_cast %66 : vector<8x8x32xbf16> to vector<64x32xbf16>
    %cst_21 = arith.constant dense<0.000000e+00> : vector<64x32xf32>
    %69 = tpu.matmul %68, %67, %cst_21 {dimension_numbers = #tpu.dot_dimension_numbers<[1], [0], [0], [1], [0, 0, 1, 1], [], []>} : vector<64x32xbf16>, vector<32x32xbf16>, vector<64x32xf32> -> vector<64x32xf32>
    %70 = arith.addf %65, %69 : vector<64x32xf32>
    %71 = vector.extract_strided_slice %49 {offsets = [1, 1, 0], sizes = [8, 8, 32], strides = [1, 1, 1]} : vector<10x10x32xbf16> to vector<8x8x32xbf16>
    %c128 = arith.constant 128 : index
    %c0_22 = arith.constant 0 : index
    %72 = vector.load %arg5[%c128, %c0_22] : memref<288x32xbf16, #tpu.memory_space<vmem>>, vector<32x32xbf16>
    %73 = vector.shape_cast %71 : vector<8x8x32xbf16> to vector<64x32xbf16>
    %cst_23 = arith.constant dense<0.000000e+00> : vector<64x32xf32>
    %74 = tpu.matmul %73, %72, %cst_23 {dimension_numbers = #tpu.dot_dimension_numbers<[1], [0], [0], [1], [0, 0, 1, 1], [], []>} : vector<64x32xbf16>, vector<32x32xbf16>, vector<64x32xf32> -> vector<64x32xf32>
    %75 = arith.addf %70, %74 : vector<64x32xf32>
    %76 = vector.extract_strided_slice %49 {offsets = [1, 2, 0], sizes = [8, 8, 32], strides = [1, 1, 1]} : vector<10x10x32xbf16> to vector<8x8x32xbf16>
    %c160 = arith.constant 160 : index
    %c0_24 = arith.constant 0 : index
    %77 = vector.load %arg5[%c160, %c0_24] : memref<288x32xbf16, #tpu.memory_space<vmem>>, vector<32x32xbf16>
    %78 = vector.shape_cast %76 : vector<8x8x32xbf16> to vector<64x32xbf16>
    %cst_25 = arith.constant dense<0.000000e+00> : vector<64x32xf32>
    %79 = tpu.matmul %78, %77, %cst_25 {dimension_numbers = #tpu.dot_dimension_numbers<[1], [0], [0], [1], [0, 0, 1, 1], [], []>} : vector<64x32xbf16>, vector<32x32xbf16>, vector<64x32xf32> -> vector<64x32xf32>
    %80 = arith.addf %75, %79 : vector<64x32xf32>
    %81 = vector.extract_strided_slice %49 {offsets = [2, 0, 0], sizes = [8, 8, 32], strides = [1, 1, 1]} : vector<10x10x32xbf16> to vector<8x8x32xbf16>
    %c192 = arith.constant 192 : index
    %c0_26 = arith.constant 0 : index
    %82 = vector.load %arg5[%c192, %c0_26] : memref<288x32xbf16, #tpu.memory_space<vmem>>, vector<32x32xbf16>
    %83 = vector.shape_cast %81 : vector<8x8x32xbf16> to vector<64x32xbf16>
    %cst_27 = arith.constant dense<0.000000e+00> : vector<64x32xf32>
    %84 = tpu.matmul %83, %82, %cst_27 {dimension_numbers = #tpu.dot_dimension_numbers<[1], [0], [0], [1], [0, 0, 1, 1], [], []>} : vector<64x32xbf16>, vector<32x32xbf16>, vector<64x32xf32> -> vector<64x32xf32>
    %85 = arith.addf %80, %84 : vector<64x32xf32>
    %86 = vector.extract_strided_slice %49 {offsets = [2, 1, 0], sizes = [8, 8, 32], strides = [1, 1, 1]} : vector<10x10x32xbf16> to vector<8x8x32xbf16>
    %c224 = arith.constant 224 : index
    %c0_28 = arith.constant 0 : index
    %87 = vector.load %arg5[%c224, %c0_28] : memref<288x32xbf16, #tpu.memory_space<vmem>>, vector<32x32xbf16>
    %88 = vector.shape_cast %86 : vector<8x8x32xbf16> to vector<64x32xbf16>
    %cst_29 = arith.constant dense<0.000000e+00> : vector<64x32xf32>
    %89 = tpu.matmul %88, %87, %cst_29 {dimension_numbers = #tpu.dot_dimension_numbers<[1], [0], [0], [1], [0, 0, 1, 1], [], []>} : vector<64x32xbf16>, vector<32x32xbf16>, vector<64x32xf32> -> vector<64x32xf32>
    %90 = arith.addf %85, %89 : vector<64x32xf32>
    %91 = vector.extract_strided_slice %49 {offsets = [2, 2, 0], sizes = [8, 8, 32], strides = [1, 1, 1]} : vector<10x10x32xbf16> to vector<8x8x32xbf16>
    %c256 = arith.constant 256 : index
    %c0_30 = arith.constant 0 : index
    %92 = vector.load %arg5[%c256, %c0_30] : memref<288x32xbf16, #tpu.memory_space<vmem>>, vector<32x32xbf16>
    %93 = vector.shape_cast %91 : vector<8x8x32xbf16> to vector<64x32xbf16>
    %cst_31 = arith.constant dense<0.000000e+00> : vector<64x32xf32>
    %94 = tpu.matmul %93, %92, %cst_31 {dimension_numbers = #tpu.dot_dimension_numbers<[1], [0], [0], [1], [0, 0, 1, 1], [], []>} : vector<64x32xbf16>, vector<32x32xbf16>, vector<64x32xf32> -> vector<64x32xf32>
    %95 = arith.addf %90, %94 : vector<64x32xf32>
    %c0_32 = arith.constant 0 : index
    %c0_33 = arith.constant 0 : index
    %96 = vector.load %arg6[%c0_32, %c0_33] : memref<1x32xf32, #tpu.memory_space<vmem>>, vector<1x32xf32>
    %97 = vector.shape_cast %96 : vector<1x32xf32> to vector<32xf32>
    %98 = vector.shape_cast %97 : vector<32xf32> to vector<1x32xf32>
    %99 = vector.broadcast %98 : vector<1x32xf32> to vector<64x32xf32>
    %100 = arith.addf %95, %99 : vector<64x32xf32>
    %101 = arith.mulf %100, %100 : vector<64x32xf32>
    %102 = arith.mulf %100, %101 : vector<64x32xf32>
    %cst_34 = arith.constant 4.471500e-02 : f32
    %103 = vector.broadcast %cst_34 : f32 to vector<64x32xf32>
    %104 = arith.mulf %103, %102 : vector<64x32xf32>
    %105 = arith.addf %100, %104 : vector<64x32xf32>
    %cst_35 = arith.constant 0.797884583 : f32
    %106 = vector.broadcast %cst_35 : f32 to vector<64x32xf32>
    %107 = arith.mulf %106, %105 : vector<64x32xf32>
    %108 = math.tanh %107 : vector<64x32xf32>
    %cst_36 = arith.constant 1.000000e+00 : f32
    %109 = vector.broadcast %cst_36 : f32 to vector<64x32xf32>
    %110 = arith.addf %109, %108 : vector<64x32xf32>
    %cst_37 = arith.constant 5.000000e-01 : f32
    %111 = vector.broadcast %cst_37 : f32 to vector<64x32xf32>
    %112 = arith.mulf %111, %110 : vector<64x32xf32>
    %113 = arith.mulf %100, %112 : vector<64x32xf32>
    %114 = vector.shape_cast %113 : vector<64x32xf32> to vector<8x8x32xf32>
    %115 = vector.extract_strided_slice %43 {offsets = [1, 0, 0], sizes = [8, 8, 32], strides = [1, 1, 1]} : vector<10x8x32xf32> to vector<8x8x32xf32>
    %cst_38 = arith.constant 3.000000e-01 : f32
    %116 = vector.broadcast %cst_38 : f32 to vector<8x8x32xf32>
    %117 = arith.mulf %116, %115 : vector<8x8x32xf32>
    %cst_39 = arith.constant 0.699999988 : f32
    %118 = vector.broadcast %cst_39 : f32 to vector<8x8x32xf32>
    %119 = arith.mulf %118, %114 : vector<8x8x32xf32>
    %120 = arith.addf %117, %119 : vector<8x8x32xf32>
    %c0_40 = arith.constant 0 : index
    %c0_41 = arith.constant 0 : index
    %c0_42 = arith.constant 0 : index
    %c0_43 = arith.constant 0 : index
    %121 = vector.load %arg7[%c0_40, %c0_41, %c0_42, %c0_43] : memref<1x8x8x32xf32, #tpu.memory_space<vmem>>, vector<1x8x8x32xf32>
    %122 = vector.shape_cast %121 : vector<1x8x8x32xf32> to vector<8x8x32xf32>
    %123 = vector.shape_cast %120 : vector<8x8x32xf32> to vector<1x8x8x32xf32>
    tpu.vector_store %arg7[%c0_40, %c0_41, %c0_42, %c0_43], %123 {strides = array<i32>} : memref<1x8x8x32xf32, #tpu.memory_space<vmem>>, vector<1x8x8x32xf32>,
    return
  }
  func.func @transform_0(%arg0: i32, %arg1: i32) -> (i32, i32, i32) {
    %c0_i32 = arith.constant 0 : i32
    %c0_i32_0 = arith.constant 0 : i32
    %c0_i32_1 = arith.constant 0 : i32
    return %arg0, %c0_i32, %c0_i32_0 : i32, i32, i32
  }
  func.func @transform_1(%arg0: i32, %arg1: i32) -> (i32, i32, i32) {
    %c0_i32 = arith.constant 0 : i32
    %c0_i32_0 = arith.constant 0 : i32
    %c0_i32_1 = arith.constant 0 : i32
    return %arg0, %c0_i32, %c0_i32_0 : i32, i32, i32
  }
  func.func @transform_2(%arg0: i32, %arg1: i32) -> (i32, i32) {
    %c0_i32 = arith.constant 0 : i32
    %c0_i32_0 = arith.constant 0 : i32
    %c0_i32_1 = arith.constant 0 : i32
    return %c0_i32, %c0_i32_0 : i32, i32
  }
  func.func @transform_3(%arg0: i32, %arg1: i32) -> (i32, i32) {
    %c0_i32 = arith.constant 0 : i32
    %c0_i32_0 = arith.constant 0 : i32
    %c0_i32_1 = arith.constant 0 : i32
    return %c0_i32, %c0_i32_0 : i32, i32
  }
  func.func @transform_4(%arg0: i32, %arg1: i32) -> (i32, i32) {
    %c0_i32 = arith.constant 0 : i32
    %c0_i32_0 = arith.constant 0 : i32
    %c0_i32_1 = arith.constant 0 : i32
    return %c0_i32, %c0_i32_0 : i32, i32
  }
  func.func @transform_5(%arg0: i32, %arg1: i32) -> (i32, i32, i32, i32) {
    %c0_i32 = arith.constant 0 : i32
    %c0_i32_0 = arith.constant 0 : i32
    %c0_i32_1 = arith.constant 0 : i32
    return %arg0, %arg1, %c0_i32, %c0_i32_0 : i32, i32, i32, i32
  }
}

</mosaic_0001>

<bundles_post_ra>
// kernel: table_encoder.1
= control target key start
LH: loop header
LB: loop body
LE: loop exit
PB: predicated region body
PF: predicated region fallthrough
CT: control target
= control target key end

     0   :  { %10 = vsyncpa [#allocation3], 0  ;;  %s2891_s0 = inlined_call_operand.vmem [shape: f32[2,10,32], index: 0, kind: input, shape index: {}]   ;;  %s2892_s1 = inlined_call_operand.vmem [shape: f32[2,8,32], index: 1, kind: input, shape index: {}]   ;;  %s2893_s2 = inlined_call_operand.vmem [shape: f32[1,32], index: 2, kind: input, shape index: {}]   ;;  %s2894_s3 = inlined_call_operand.vmem [shape: bf16[288,32], index: 3, kind: input, shape index: {}]   ;;  %s2895_s4 = inlined_call_operand.vmem [shape: f32[1,32], index: 4, kind: input, shape index: {}]   ;;  %s2896_s5 = inlined_call_operand.hbm [shape: f32[2,8,8,32], index: 5, kind: output, shape index: {}]  }
   0x1   :  { %12 = vsyncpa [#allocation3 + $0x1], 0  ;;  %s2030_s18 = smov 0   ;;  %s2032_s19 = smov 0  }
   0x2   :  { %s2034_s20 = smov 0   ;;  %s2036_s21 = smov 0  }
   0x3   :  { %s2038_s22 = smov 0   ;;  %s2040_s23 = smov 0  }
   0x4 LB: > { %s1663_s24 = sadd.s32 4294967295, %s1995_s23   ;;  %s1664_s25 = sadd.s32 4294967294, %s1995_s23   ;;  %s1995_s23 = sphi %s2040_s23, %s18_s23   ;;  %s1991_s22 = sphi %s2038_s22, %s2944_s22   ;;  %s1987_s21 = sphi %s2036_s21, %s2943_s21   ;;  %s1983_s20 = sphi %s2034_s20, %s2942_s20   ;;  %s1979_s19 = sphi %s2032_s19, %s2941_s19   ;;  %s1975_s18 = sphi %s2030_s18, %s2940_s18  }
   0x5   : > { %s30_s26 = sadd.s32 1, %s1991_s22  ;;  %s154_s27 = sadd.s32 1, %s1983_s20 }
   0x6   : > { %p32_p0 = scmp.ge.s32.totalorder %s30_s26, 2  ;;  %p164_p1 = scmp.ne.s32.totalorder %s1983_s20, %s1979_s19 }
   0x7   : > { %p165_p2 = scmp.eq.s32.totalorder %s1663_s24, 1  ;;  %p170_p3 = scmp.ne.s32.totalorder %s1979_s19, %s1975_s18 }
   0x8   : > { %s2946_s26 = smov (%p32_p0, %s30_s26), 0  ;;  %p171_p5 = scmp.eq.s32.totalorder %s1664_s25, 1 }
   0x9   : > { %p2070_p4 = por %p165_p2, %p164_p1  ;;  %s149_s29 = ssub.s32 %s1991_s22, %s2946_s26 }
   0xa   : > { %p1667_p6 = scmp.ge.s32.totalorder %s1995_s23, 1  ;;  %p152_p7 = scmp.eq.s32.totalorder %s149_s29, 0 }
   0xb   : > { %p2077_p8 = por %p171_p5, %p170_p3  ;;  %p213_p9 = scmp.lt.s32.totalorder %s1995_s23, 3 }
   0xc   : > { %s2083_s6 = scalar_select %p152_p7, %s1983_s20, %s154_s27  }
   0xd   : > { %p214_p10 = pnand %p1667_p6, %p213_p9 }
   0xf   : > { %217 = sbr.rel (%p214_p10) target bundleno = 422 (0x1a6), region = 40 }
  0x14   : > { %v1799_v0 = vld [vmem:[%s2894_s3 + $0x18] sm:$0xff]  ;;  %p245_p11 = scmp.lt.s32.totalorder %s1987_s21, 1  ;;  %v1798_v1 = vld [vmem:[%s2894_s3 + $0x10] sm:$0xff]  ;;  %v405_v7 = vlaneseq  ;;  %v2107_v11 = vld [vmem:[%s2893_s2] ss:$0 sm:$0xff]  ;;  %v2897_v59 = vmov 0  }
  0x15   : > { %1815 = vmatpush.bf16.msra.mxu1 %v1799_v0  ;;  %1816 = vmatpush.bf16.msra.mxu2 %v1799_v0  ;;  %vm590_vm7 = vcmask 1040384   ;;  %vm591_vm8 = vsmask.f32 256  ;;  %vm603_vm9 = vcmask 1044480   ;;  %vm604_vm10 = vsmask.f32 4352 }
  0x16   : > { %s246_s11 = scalar_select %p245_p11, %s1987_s21, 1  ;;  %1817 = vmatpush.bf16.msra.mxu3 %v1799_v0  ;;  %822 = vmatpush.bf16.msra.mxu0 %v1799_v0  ;;  %v2112_v17 = vshrl.u32 %v405_v7, 7  ;;  %vm2256_vm11 = vmand %vm590_vm7, %vm591_vm8  ;;  %vm664_vm13 = vsmask.f32 3328  ;;  %vm665_vm14 = vsmask.f32 7440 }
  0x17   : > { %vm2262_vm12 = vmand %vm603_vm9, %vm604_vm10  ;;  %s1814_s14 = sshll.u32 %s1987_s21, 6  ;;  %s1937_s9 = scalar_lea.hbm %s2896_s5, 128 }
  0x18   : > { %s1795_s12 = sshll.u32 %s246_s11, 4  ;;  %s1671_s13 = sshll.u32 %s246_s11, 3  ;;  %v410_v30 = vadd.s32 4294967295, %v2112_v17 }
  0x19   : > { %s2096_s16 = scalar_lea.vmem %s2891_s0, %s1795_s12  ;;  %s253_s25 = scalar_lea.vmem %s2892_s1, %s1671_s13  ;;  %1818 = vmatpush.bf16.msra.mxu1 %v1798_v1  ;;  %1819 = vmatpush.bf16.msra.mxu2 %v1798_v1 }
  0x1a   : > { %v258_v2 = vld [vmem:[%s2096_s16] sm:$0xff]  ;;  %1820 = vmatpush.bf16.msra.mxu3 %v1798_v1  ;;  %823 = vmatpush.bf16.msra.mxu0 %v1798_v1  ;;  %vm412_vm0 = vcmp.ge.s32.totalorder %v410_v30, 0  ;;  %s242_s11 = sand.u32 1, %s1979_s19   ;;  %s1572_s24 = scalar_lea.hbm %s2896_s5, %s1814_s14 }
  0x1b   : > { %v265_v3 = vrot.slane %v258_v2, 2  ;;  %v266_v4 = vrot.slane %v258_v2, 3  ;;  %v267_v5 = vrot.slane %v258_v2, 4  ;;  %v2102_v6 = vld [vmem:[%s253_s25] sm:$0xff]  ;;  %v268_v8 = vrot.slane %v258_v2, 5  ;;  %s1668_s12 = sshll.u32 %s242_s11, 6 }
  0x1c   : > { %v269_v19 = vrot.slane %v258_v2, 6  ;;  %v270_v20 = vrot.slane %v258_v2, 7  ;;  %v264_v37 = vrot.slane %v258_v2, 1  ;;  %v272_v40 = vperm.slane %v258_v2, 0  ;;  %s2805_s13 = scalar_lea.vmem [#allocation2], %s1668_s12  ;;  %s1575_s27 = sshll.u32 %s1572_s24, 4  ;;  %s1576_s27 = int_to_ptr.hbm [resolvable:$true] %s1575_s27 }
  0x1d   : > { %v274_v9 = vperm.slane %v265_v3, 0  ;;  %v275_v10 = vperm.slane %v266_v4, 0  ;;  %v276_v12 = vperm.slane %v267_v5, 0  ;;  %v277_v13 = vperm.slane %v268_v8, 0  ;;  %s1573_s25 = sshll.u32 %s2805_s13, 4  ;;  %s1559_s21 = scalar_lea.sflag [#allocation3], %s242_s11  ;;  %s1574_s25 = int_to_ptr.vmem [resolvable:$true] %s1573_s25 }
  0x1e   : > { %v278_v25 = vperm.slane %v269_v19, 0  ;;  %v279_v26 = vperm.slane %v270_v20, 0  ;;  %v273_v50 = vperm.slane %v264_v37, 0  ;;  %v292_v54 = vadd.f32 %v272_v40, %v2102_v6  ;;  %s1931_s29 = sshra.s32 %s1576_s27, 4  ;;  %s1932_s29 = int_to_ptr.hbm [resolvable:$true] %s1931_s29 }
  0x1f   : > { %v294_v14 = vadd.f32 %v274_v9, %v2102_v6  ;;  %v295_v15 = vadd.f32 %v275_v10, %v2102_v6  ;;  %v296_v16 = vadd.f32 %v276_v12, %v2102_v6  ;;  %v297_v18 = vadd.f32 %v277_v13, %v2102_v6  ;;  %s1933_s7 = scalar_lea.hbm %s1932_s29, 64  ;;  %p1938_p1 = scmp.lt.s32.totalorder %s1932_s29, %s2896_s5 }
  0x20   : > { %v298_v32 = vadd.f32 %v278_v25, %v2102_v6  ;;  %v299_v33 = vadd.f32 %v279_v26, %v2102_v6  ;;  %v293_v58 = vadd.f32 %v273_v50, %v2102_v6  ;;  %v2162_v60 = vsel %vm412_vm0, 1, %v2897_v59  ;;  %p1934_p12 = scmp.ne.s32.totalorder %s1932_s29, %s1933_s7  ;;  %p1939_p2 = scmp.lt.s32.totalorder %s1937_s9, %s1933_s7 }
  0x21   : > { %v2116_v21 = vadd.f32 %v2107_v11, %v294_v14  ;;  %v2119_v22 = vadd.f32 %v2107_v11, %v295_v15  ;;  %v2122_v23 = vadd.f32 %v2107_v11, %v296_v16  ;;  %v2125_v24 = vadd.f32 %v2107_v11, %v297_v18 }
  0x22   : > { %v2143_v39 = vadd.f32 %v2107_v11, %v298_v32  ;;  %v2146_v43 = vadd.f32 %v2107_v11, %v299_v33  ;;  %v2165_v62 = vadd.f32 %v2107_v11, %v292_v54  ;;  %v2168_v2 = vadd.f32 %v2107_v11, %v293_v58  ;;  %p1935_p13 = pnand %p1934_p12, %p2070_p4  ;;  %p1940_p3 = por %p1939_p2, %p1938_p1 }
  0x23   : > { %v317_v27 = vmul.f32 %v2116_v21, %v2116_v21  ;;  %v318_v28 = vmul.f32 %v2119_v22, %v2119_v22  ;;  %v319_v29 = vmul.f32 %v2122_v23, %v2122_v23  ;;  %v320_v31 = vmul.f32 %v2125_v24, %v2125_v24 }
  0x24   : > { %v321_v46 = vmul.f32 %v2143_v39, %v2143_v39  ;;  %v322_v49 = vmul.f32 %v2146_v43, %v2146_v43  ;;  %v315_v3 = vmul.f32 %v2165_v62, %v2165_v62  ;;  %v422_v4 = vperm.slane %v2162_v60, 2  ;;  %p1936_p0 = pneg %p1935_p13 }
  0x25   : > { %v327_v34 = vmul.f32 %v317_v27, %v2116_v21  ;;  %v328_v35 = vmul.f32 %v318_v28, %v2119_v22  ;;  %v329_v36 = vmul.f32 %v319_v29, %v2122_v23  ;;  %v330_v38 = vmul.f32 %v320_v31, %v2125_v24 }
  0x26   : > { %v331_v53 = vmul.f32 %v321_v46, %v2143_v39  ;;  %v332_v57 = vmul.f32 %v322_v49, %v2146_v43  ;;  %v423_v8 = vperm.slane %v2162_v60, 3  ;;  %v316_v9 = vmul.f32 %v2168_v2, %v2168_v2  ;;  %p1941_p5 = pnand %p1940_p3, %p1936_p0 }
  0x27   : > { %v337_v41 = vmul.f32 0.044715, %v327_v34  ;;  %v338_v42 = vmul.f32 0.044715, %v328_v35  ;;  %v339_v44 = vmul.f32 0.044715, %v329_v36  ;;  %v325_v10 = vmul.f32 %v315_v3, %v2165_v62 }
  0x28   : > { %v340_v45 = vmul.f32 0.044715, %v330_v38  ;;  %v341_v0 = vmul.f32 0.044715, %v331_v53  ;;  %v342_v1 = vmul.f32 0.044715, %v332_v57  ;;  %v326_v16 = vmul.f32 %v316_v9, %v2168_v2 }
  0x29   : > { %v347_v47 = vadd.f32 %v337_v41, %v2116_v21  ;;  %v348_v48 = vadd.f32 %v338_v42, %v2119_v22  ;;  %v349_v51 = vadd.f32 %v339_v44, %v2122_v23  ;;  %v424_v12 = vperm.slane %v2162_v60, 4 }
  0x2a   : > { %v350_v52 = vadd.f32 %v340_v45, %v2125_v24  ;;  %v351_v5 = vadd.f32 %v341_v0, %v2143_v39  ;;  %v352_v7 = vadd.f32 %v342_v1, %v2146_v43  ;;  %v425_v13 = vperm.slane %v2162_v60, 5 }
  0x2b   : > { %v357_v55 = vmul.f32 0.7978846, %v347_v47  ;;  %v358_v56 = vmul.f32 0.7978846, %v348_v48  ;;  %v359_v61 = vmul.f32 0.7978846, %v349_v51 }
  0x2c   : > { %v360_v63 = vmul.f32 0.7978846, %v350_v52  ;;  %v361_v14 = vmul.f32 0.7978846, %v351_v5  ;;  %v362_v15 = vmul.f32 0.7978846, %v352_v7 }
  0x2d   : > { %1881 = vtanh.f32 %v357_v55  ;;  %v335_v18 = vmul.f32 0.044715, %v325_v10  ;;  %vm2182_vm1 = vcmp.ne.s32.totalorder %v422_v4, 0  ;;  %v426_v25 = vperm.slane %v2162_v60, 6 }
  0x2e   : > { %1883 = vtanh.f32 %v358_v56  ;;  %v427_v26 = vperm.slane %v2162_v60, 7  ;;  %v336_v29 = vmul.f32 0.044715, %v326_v16  ;;  %vm2189_vm2 = vcmp.ne.s32.totalorder %v423_v8, 0 }
  0x2f   : > { %1885 = vtanh.f32 %v359_v61  ;;  %v345_v30 = vadd.f32 %v335_v18, %v2165_v62  ;;  %vm2193_vm3 = vcmp.ne.s32.totalorder %v424_v12, 0  ;;  %vm2197_vm4 = vcmp.ne.s32.totalorder %v425_v13, 0 }
  0x30   : > { %1887 = vtanh.f32 %v360_v63  ;;  %v346_v40 = vadd.f32 %v336_v29, %v2168_v2  ;;  %vm2202_vm5 = vcmp.ne.s32.totalorder %v426_v25, 0  ;;  %vm2206_vm6 = vcmp.ne.s32.totalorder %v427_v26, 0 }
  0x31   : > { %1889 = vtanh.f32 %v361_v14  ;;  %v355_v41 = vmul.f32 0.7978846, %v345_v30  ;;  %v420_v9 = vperm.slane %v2162_v60, 0  ;;  %v421_v14 = vperm.slane %v2162_v60, 1 }
  0x32   : > { %1891 = vtanh.f32 %v362_v15  ;;  %v356_v49 = vmul.f32 0.7978846, %v346_v40  ;;  %vm803_vm0 = vcmask 261120  }
  0x33   : > { %v1882_v19 = vpop.eup %1881  ;;  %1893 = vtanh.f32 %v355_v41  ;;  %vm2325_vm15 = vcmp.ne.s32.totalorder %v420_v9, 0 }
  0x34   : > { %v1884_v27 = vpop.eup %1883  ;;  %v377_v28 = vadd.f32 1.0, %v1882_v19  ;;  %1895 = vtanh.f32 %v356_v49 }
  0x35   : > { %v1886_v31 = vpop.eup %1885  ;;  %v378_v32 = vadd.f32 1.0, %v1884_v27 }
  0x36   : > { %v1888_v36 = vpop.eup %1887  ;;  %v387_v37 = vmul.f32 0.5, %v377_v28  ;;  %v379_v38 = vadd.f32 1.0, %v1886_v31 }
  0x37   : > { %v388_v42 = vmul.f32 0.5, %v378_v32  ;;  %v380_v44 = vadd.f32 1.0, %v1888_v36  ;;  %v1890_v50 = vpop.eup %1889 }
  0x38   : > { %v397_v47 = vmul.f32 %v387_v37, %v2116_v21  ;;  %v389_v48 = vmul.f32 0.5, %v379_v38  ;;  %v1892_v53 = vpop.eup %1891  ;;  %v381_v56 = vadd.f32 1.0, %v1890_v50 }
  0x39   : > { %v398_v51 = vmul.f32 %v388_v42, %v2119_v22  ;;  %v390_v52 = vmul.f32 0.5, %v380_v44  ;;  %v382_v58 = vadd.f32 1.0, %v1892_v53 }
  0x3a   : > { %v2214_v54 = vsel %vm2182_vm1, %v397_v47, 0.0  ;;  %v399_v55 = vmul.f32 %v389_v48, %v2122_v23  ;;  %v391_v0 = vmul.f32 0.5, %v381_v56  ;;  %vm2338_vm1 = vcmp.ne.s32.totalorder %v421_v14, 0 }
  0x3b   : > { %v2219_v21 = vsel %vm2189_vm2, %v398_v51, 0.0  ;;  %v472_v22 = vpack.c.bf16 %v2214_v54, %v2214_v54  ;;  %v400_v57 = vmul.f32 %v390_v52, %v2125_v24  ;;  %v392_v4 = vmul.f32 0.5, %v382_v58  ;;  %v1894_v24 = vpop.eup %1893  ;;  %vm2348_vm2 = vmor %vm664_vm13, %vm665_vm14 }
  0x3c   : > { %2917 = vst [vmem:[#allocation5_spill] sm:$0xff] %v2219_v21  ;;  %v473_v61 = vpack.c.bf16 %v2219_v21, %v2219_v21  ;;  %v2228_v63 = vsel %vm2193_vm3, %v399_v55, 0.0  ;;  %v401_v8 = vmul.f32 %v391_v0, %v2143_v39  ;;  %v375_v19 = vadd.f32 1.0, %v1894_v24  ;;  %v1896_v27 = vpop.eup %1895 }
  0x3d   : > { %2918 = vst [vmem:[#allocation6_spill] sm:$0xff] %v2228_v63  ;;  %v492_v23 = vunpack.c.l.b16 %v472_v22  ;;  %v2232_v1 = vsel %vm2197_vm4, %v400_v57, 0.0  ;;  %v474_v3 = vpack.c.bf16 %v2228_v63, %v2228_v63  ;;  %v402_v13 = vmul.f32 %v392_v4, %v2146_v43 }
  0x3e   : > { %2919 = vst [vmem:[#allocation7_spill] sm:$0xff] %v2232_v1  ;;  %v493_v5 = vunpack.c.l.b16 %v473_v61  ;;  %v475_v7 = vpack.c.bf16 %v2232_v1, %v2232_v1  ;;  %v2244_v18 = vsel %vm2202_vm5, %v401_v8, 0.0  ;;  %v376_v46 = vadd.f32 1.0, %v1896_v27 }
  0x3f   : > { %v502_v10 = vpack.c.b16 %v492_v23, %v492_v23  ;;  %v494_v12 = vunpack.c.l.b16 %v474_v3  ;;  %2920 = vst [vmem:[#allocation8_spill] sm:$0xff] %v2244_v18  ;;  %v2248_v39 = vsel %vm2206_vm6, %v402_v13, 0.0  ;;  %v476_v30 = vpack.c.bf16 %v2244_v18, %v2244_v18 }
  0x40   : > { %v503_v15 = vpack.c.b16 %v493_v5, %v493_v5  ;;  %v495_v16 = vunpack.c.l.b16 %v475_v7  ;;  %2921 = vst [vmem:[#allocation9_spill] sm:$0xff] %v2248_v39  ;;  %v477_v34 = vpack.c.bf16 %v2248_v39, %v2248_v39  ;;  %v2268_v50 = vmul.f32 0.5, %v375_v19 }
  0x41   : > { %v525_v20 = vshrl.u32 %v502_v10, 16  ;;  %v528_v25 = vshll.u32 %v502_v10, 16  ;;  %v504_v26 = vpack.c.b16 %v494_v12, %v494_v12  ;;  %v496_v40 = vunpack.c.l.b16 %v476_v30 }
  0x42   : > { %v532_v28 = vshrl.u32 %v503_v15, 16  ;;  %v535_v29 = vshll.u32 %v503_v15, 16  ;;  %v505_v43 = vpack.c.b16 %v495_v16, %v495_v16  ;;  %v497_v45 = vunpack.c.l.b16 %v477_v34 }
  0x43   : > { %v527_v31 = vrot.slane %v525_v20, 7  ;;  %v539_v32 = vshrl.u32 %v504_v26, 16  ;;  %v542_v33 = vshll.u32 %v504_v26, 16  ;;  %v2266_v49 = vpack.c.b16 %v496_v40, %v496_v40 }
  0x44   : > { %v534_v35 = vrot.slane %v532_v28, 7  ;;  %v546_v37 = vshrl.u32 %v505_v43, 16  ;;  %v549_v38 = vshll.u32 %v505_v43, 16  ;;  %v2272_v53 = vpack.c.b16 %v497_v45, %v497_v45  ;;  %v1801_v45 = vld [vmem:[%s2894_s3 + $0x28] sm:$0xff] }
  0x45   : > { %v530_v41 = vor.u32 %v528_v25, %v527_v31  ;;  %v541_v44 = vrot.slane %v539_v32, 7  ;;  %v2274_v55 = vmul.f32 0.5, %v376_v46  ;;  %v553_v58 = vshrl.u32 %v2266_v49, 16  ;;  %983 = vmatpush.bf16.msrb.mxu2 %v1801_v45  ;;  %v1803_v46 = vld [vmem:[%s2894_s3 + $0x38] sm:$0xff] }
  0x46   : > { %v537_v47 = vor.u32 %v535_v29, %v534_v35  ;;  %v548_v48 = vrot.slane %v546_v37, 7  ;;  %1054 = vmatpush.bf16.msrb.mxu3 %v1803_v46  ;;  %vm906_vm3 = vcmask 1042432   ;;  %vm907_vm4 = vcmask 1046532  }
  0x47   : > { %v595_v51 = vsel %vm2256_vm11, 0, %v530_v41  ;;  %v544_v52 = vor.u32 %v542_v33, %v541_v44  ;;  %vm2498_vm5 = vmor %vm906_vm3, %vm907_vm4 }
  0x48   : > { %v596_v56 = vsel %vm2256_vm11, 0, %v537_v47  ;;  %v608_v22 = vsel %vm2262_vm12, %v595_v51, 0  ;;  %v551_v57 = vor.u32 %v549_v38, %v548_v48 }
  0x49   : > { %v609_v61 = vsel %vm2262_vm12, %v596_v56, 0  ;;  %v2283_v0 = vunpack.c.l.b16 %v608_v22  ;;  %v637_v23 = vunpack.c.h.b16 %v608_v22  ;;  %v597_v3 = vsel %vm2256_vm11, 0, %v544_v52 }
  0x4a   : > { %v2287_v4 = vunpack.c.l.b16 %v609_v61  ;;  %v639_v24 = vunpack.c.h.b16 %v609_v61  ;;  %v598_v5 = vsel %vm2256_vm11, 0, %v551_v57  ;;  %v610_v7 = vsel %vm2262_vm12, %v597_v3, 0 }
  0x4b   : > { %v2295_v8 = vpack.c.b16 %v2283_v0, %v2283_v0  ;;  %v2297_v10 = vpack.c.b16 %v637_v23, %v637_v23  ;;  %v611_v12 = vsel %vm2262_vm12, %v598_v5, 0  ;;  %v2301_v13 = vunpack.c.l.b16 %v610_v7 }
  0x4c   : > { %v2305_v15 = vpack.c.b16 %v2287_v4, %v2287_v4  ;;  %v2307_v16 = vpack.c.b16 %v639_v24, %v639_v24  ;;  %v641_v19 = vunpack.c.h.b16 %v610_v7  ;;  %v2309_v20 = vunpack.c.l.b16 %v611_v12 }
  0x4d   : > { %v696_v25 = vshrl.u32 %v2295_v8, 16  ;;  %v699_v26 = vshll.u32 %v2295_v8, 16  ;;  %v705_v27 = vshll.u32 %v2297_v10, 16  ;;  %v643_v28 = vunpack.c.h.b16 %v611_v12 }
  0x4e   : > { %v710_v29 = vshrl.u32 %v2305_v15, 16  ;;  %v713_v43 = vshll.u32 %v2305_v15, 16  ;;  %v719_v30 = vshll.u32 %v2307_v16, 16  ;;  %v2319_v31 = vpack.c.b16 %v2301_v13, %v2301_v13 }
  0x4f   : > { %v698_v32 = vrot.slane %v696_v25, 4  ;;  %v701_v33 = vrot.slane %v699_v26, 5  ;;  %v707_v34 = vrot.slane %v705_v27, 5  ;;  %v2321_v35 = vpack.c.b16 %v641_v19, %v641_v19 }
  0x50   : > { %v712_v38 = vrot.slane %v710_v29, 4  ;;  %v715_v40 = vrot.slane %v713_v43, 5  ;;  %v721_v41 = vrot.slane %v719_v30, 5  ;;  %v2331_v44 = vpack.c.b16 %v2309_v20, %v2309_v20 }
  0x51   : > { %v702_v9 = vor.u32 %v701_v33, %v698_v32  ;;  %v2342_v47 = vpack.c.b16 %v643_v28, %v643_v28  ;;  %v724_v48 = vshrl.u32 %v2319_v31, 16  ;;  %v727_v51 = vshll.u32 %v2319_v31, 16 }
  0x52   : > { %v716_v56 = vor.u32 %v715_v40, %v712_v38  ;;  %v733_v60 = vshll.u32 %v2321_v35, 16  ;;  %v738_v14 = vshrl.u32 %v2331_v44, 16  ;;  %v741_v22 = vshll.u32 %v2331_v44, 16 }
  0x53   : > { %v703_v57 = vrot.slane %v702_v9, 4  ;;  %v726_v61 = vrot.slane %v724_v48, 4  ;;  %v729_v23 = vrot.slane %v727_v51, 5  ;;  %v747_v3 = vshll.u32 %v2342_v47, 16 }
  0x54   : > { %v717_v24 = vrot.slane %v716_v56, 4  ;;  %v735_v5 = vrot.slane %v733_v60, 5  ;;  %v740_v7 = vrot.slane %v738_v14, 4  ;;  %v743_v12 = vrot.slane %v741_v22, 5 }
  0x55   : > { %v708_v19 = vsel %vm2348_vm2, %v703_v57, %v707_v34  ;;  %v730_v25 = vor.u32 %v729_v23, %v726_v61  ;;  %v749_v26 = vrot.slane %v747_v3, 5  ;;  %v555_v27 = vrot.slane %v553_v58, 7  ;;  %v1797_v3 = vld [vmem:[%s2894_s3 + $0x8] sm:$0xff] }
  0x56   : > { %v722_v28 = vsel %vm2348_vm2, %v717_v24, %v721_v41  ;;  %v2360_v29 = vunpack.c.l.b16 %v708_v19  ;;  %v744_v43 = vor.u32 %v743_v12, %v740_v7  ;;  %v556_v30 = vshll.u32 %v2266_v49, 16  ;;  %v1800_v24 = vld [vmem:[%s2894_s3 + $0x20] sm:$0xff]  ;;  %879 = vmatpush.bf16.msrb.mxu1 %v1797_v3 }
  0x57   : > { %v2363_v32 = vunpack.c.l.b16 %v722_v28  ;;  %v731_v33 = vrot.slane %v730_v25, 4  ;;  %v560_v38 = vshrl.u32 %v2272_v53, 16  ;;  %v563_v40 = vshll.u32 %v2272_v53, 16  ;;  %v1805_v25 = vld [vmem:[%s2894_s3 + $0x48] sm:$0xff]  ;;  %984 = vmatpush.bf16.msrb.mxu2 %v1800_v24 }
  0x58   : > { %v745_v45 = vrot.slane %v744_v43, 4  ;;  %v558_v34 = vor.u32 %v556_v30, %v555_v27  ;;  %v395_v58 = vmul.f32 %v2268_v50, %v2165_v62  ;;  %v396_v41 = vmul.f32 %v2274_v55, %v2168_v2  ;;  %v1802_v43 = vld [vmem:[%s2894_s3 + $0x30] sm:$0xff]  ;;  %v2433_v30 = vld [vmem:[%s2096_s16 + $0x8] sm:$0x3]  ;;  %1141 = vmatpush.bf16.msrb.mxu0 %v1805_v25 }
  0x59   : > { %v2373_v9 = vpack.c.b16 %v2363_v32, %v2360_v29  ;;  %v736_v49 = vsel %vm2348_vm2, %v731_v33, %v735_v5  ;;  %v562_v48 = vrot.slane %v560_v38, 7  ;;  %1055 = vmatpush.bf16.msrb.mxu3 %v1802_v43 }
  0x5a   : > { %v750_v51 = vsel %vm2348_vm2, %v745_v45, %v749_v26  ;;  %v2379_v53 = vunpack.c.l.b16 %v736_v49  ;;  %v599_v56 = vsel %vm2256_vm11, 0, %v558_v34  ;;  %v460_v62 = vsel %vm2325_vm15, %v395_v58, 0.0  ;;  %v1796_v34 = vld [vmem:[%s2894_s3] sm:$0xff]  ;;  %v1809_v58 = vld [vmem:[%s2894_s3 + $0x68] sm:$0xff] }
  0x5b   : > { %1681 = vmatmul.msk.bf16.vlgmr.msra.gmra.mxu1 %vm803_vm0, %v2373_v9  ;;  %v2387_v2 = vunpack.c.l.b16 %v750_v51  ;;  %v565_v50 = vor.u32 %v563_v40, %v562_v48  ;;  %v612_v55 = vsel %vm2262_vm12, %v599_v56, 0  ;;  %v2393_v60 = vsel %vm2338_vm1, %v396_v41, 0.0  ;;  %v1804_v51 = vld [vmem:[%s2894_s3 + $0x40] sm:$0xff] }
  0x5c   : > { %v2395_v14 = vunpack.c.l.b16 %v612_v55  ;;  %v645_v22 = vunpack.c.h.b16 %v612_v55  ;;  %v470_v57 = vpack.c.bf16 %v460_v62, %v460_v62  ;;  %v471_v37 = vpack.c.bf16 %v2393_v60, %v2393_v60  ;;  %880 = vmatpush.bf16.msrb.mxu1 %v1796_v34  ;;  %1142 = vmatpush.bf16.msrb.mxu0 %v1804_v51 }
  0x5d   : > { %v2401_v61 = vpack.c.b16 %v2387_v2, %v2379_v53  ;;  %v600_v23 = vsel %vm2256_vm11, 0, %v565_v50  ;;  %v280_v56 = vperm.slane %v2433_v30, 0 }
  0x5e   : > { %v613_v5 = vsel %vm2262_vm12, %v600_v23, 0  ;;  %v2418_v7 = vpack.c.b16 %v2395_v14, %v2395_v14  ;;  %v2420_v12 = vpack.c.b16 %v645_v22, %v645_v22  ;;  %v490_v19 = vunpack.c.l.b16 %v470_v57 }
  0x5f   : > { %1682 = vmatmul.msk.bf16.vlgmr.msra.gmra.mxu2 %vm803_vm0, %v2401_v61  ;;  %v2427_v26 = vunpack.c.l.b16 %v613_v5  ;;  %v647_v27 = vunpack.c.h.b16 %v613_v5  ;;  %v491_v28 = vunpack.c.l.b16 %v471_v37 }
  0x60   : > { %v752_v33 = vshrl.u32 %v2418_v7, 16  ;;  %v755_v38 = vshll.u32 %v2418_v7, 16  ;;  %v761_v40 = vshll.u32 %v2420_v12, 16  ;;  %v500_v45 = vpack.c.b16 %v490_v19, %v490_v19  ;;  %1274 = vmatpush.bf16.msra.mxu2 %v1809_v58 }
  0x61   : > { %v2446_v41 = vpack.c.b16 %v2427_v26, %v2427_v26  ;;  %v2448_v49 = vpack.c.b16 %v647_v27, %v647_v27  ;;  %v501_v48 = vpack.c.b16 %v491_v28, %v491_v28  ;;  %v300_v28 = vadd.f32 %v280_v56, %v2102_v6 }
  0x62   : > { %v754_v62 = vrot.slane %v752_v33, 4  ;;  %v757_v50 = vrot.slane %v755_v38, 5  ;;  %v763_v55 = vrot.slane %v761_v40, 5  ;;  %v511_v22 = vshrl.u32 %v500_v45, 16 }
  0x63   : > { %v766_v57 = vshrl.u32 %v2446_v41, 16  ;;  %v769_v37 = vshll.u32 %v2446_v41, 16  ;;  %v775_v23 = vshll.u32 %v2448_v49, 16  ;;  %v514_v46 = vshll.u32 %v500_v45, 16 }
  0x64   : > { %v758_v3 = vor.u32 %v757_v50, %v754_v62  ;;  %v513_v24 = vrot.slane %v511_v22, 7  ;;  %v518_v5 = vshrl.u32 %v501_v48, 16  ;;  %v521_v19 = vshll.u32 %v501_v48, 16 }
  0x65   : > { %v768_v25 = vrot.slane %v766_v57, 4  ;;  %v771_v27 = vrot.slane %v769_v37, 5  ;;  %v777_v59 = vrot.slane %v775_v23, 5  ;;  %v2465_v48 = vadd.f32 %v2107_v11, %v300_v28 }
  0x66   : > { %v759_v33 = vrot.slane %v758_v3, 4  ;;  %v516_v38 = vor.u32 %v514_v46, %v513_v24  ;;  %v520_v40 = vrot.slane %v518_v5, 7 }
  0x67   : > { %v772_v58 = vor.u32 %v771_v27, %v768_v25  ;;  %v323_v5 = vmul.f32 %v2465_v48, %v2465_v48 }
  0x68   : > { %v764_v39 = vsel %vm2348_vm2, %v759_v33, %v763_v55  ;;  %v523_v45 = vor.u32 %v521_v19, %v520_v40  ;;  %v593_v43 = vsel %vm2256_vm11, 0, %v516_v38 }
  0x69   : > { %v773_v62 = vrot.slane %v772_v58, 4  ;;  %v606_v34 = vsel %vm2262_vm12, %v593_v43, 0  ;;  %v2467_v51 = vunpack.c.l.b16 %v764_v39  ;;  %v1811_v39 = vld [vmem:[%s2894_s3 + $0x78] sm:$0xff] }
  0x6a   : > { %v594_v56 = vsel %vm2256_vm11, 0, %v523_v45  ;;  %v632_v50 = vunpack.c.l.b16 %v606_v34  ;;  %v633_v22 = vunpack.c.h.b16 %v606_v34 }
  0x6b   : > { %v778_v55 = vsel %vm2348_vm2, %v773_v62, %v777_v59  ;;  %v607_v57 = vsel %vm2262_vm12, %v594_v56, 0  ;;  %v1807_v59 = vld [vmem:[%s2894_s3 + $0x58] sm:$0xff] }
  0x6c   : > { %v2475_v37 = vunpack.c.l.b16 %v778_v55  ;;  %v2477_v23 = vunpack.c.l.b16 %v607_v57  ;;  %v635_v46 = vunpack.c.h.b16 %v607_v57  ;;  %v648_v3 = vpack.c.b16 %v632_v50, %v632_v50  ;;  %1215 = vmatpush.bf16.msra.mxu1 %v1807_v59 }
  0x6d   : > { %v649_v24 = vpack.c.b16 %v633_v22, %v633_v22  ;;  %v333_v59 = vmul.f32 %v323_v5, %v2465_v48 }
  0x6e   : > { %v2489_v19 = vpack.c.b16 %v2475_v37, %v2467_v51  ;;  %v650_v25 = vpack.c.b16 %v2477_v23, %v2477_v23  ;;  %v651_v27 = vpack.c.b16 %v635_v46, %v635_v46  ;;  %v668_v28 = vshrl.u32 %v648_v3, 16 }
  0x6f   : > { %v671_v33 = vshll.u32 %v648_v3, 16  ;;  %v677_v38 = vshll.u32 %v649_v24, 16  ;;  %v845_v40 = vpack.c.b16 %v2477_v23, %v632_v50  ;;  %v1696_v58 = vrot.slane %v648_v3, 9 }
  0x70   : > { %1683 = vmatmul.msk.bf16.vlgmr.msra.gmra.mxu3 %vm803_vm0, %v2489_v19  ;;  %v670_v45 = vrot.slane %v668_v28, 4  ;;  %v682_v43 = vshrl.u32 %v650_v25, 16  ;;  %v685_v62 = vshll.u32 %v650_v25, 16  ;;  %v691_v34 = vshll.u32 %v651_v27, 16 }
  0x71   : > { %v673_v22 = vrot.slane %v671_v33, 5  ;;  %1692 = vmatmul.msk.bf16.vlgmr.msrb.gmra.mxu1 %vm803_vm0, %v845_v40  ;;  %v911_v55 = vrot.slane %v649_v24, 5  ;;  %v1697_v50 = vrot.slane %v650_v25, 9  ;;  %1349 = vmatpush.bf16.msra.mxu3 %v1811_v39  ;;  %v915_v3 = vrot.slane %v651_v27, 5 }
  0x72   : > { %v684_v57 = vrot.slane %v682_v43, 4  ;;  %v687_v46 = vrot.slane %v685_v62, 5  ;;  %v679_v18 = vrot.slane %v677_v38, 5  ;;  %v693_v21 = vrot.slane %v691_v34, 5 }
  0x73   : > { %v674_v28 = vor.u32 %v673_v22, %v670_v45  ;;  %v912_v1 = vsel %vm2498_vm5, %v1696_v58, %v911_v55  ;;  %v2508_v33 = vsel %vm2498_vm5, %v1697_v50, %v915_v3  ;;  %v343_v43 = vmul.f32 0.044715, %v333_v59 }
  0x74   : > { %v688_v63 = vor.u32 %v687_v46, %v684_v57  ;;  %v941_v40 = vunpack.c.l.b16 %v912_v1  ;;  %v942_v39 = vunpack.c.l.b16 %v2508_v33  ;;  %v1698_v1 = vrot.slane %v2295_v8, 9 }
  0x75   : > { %v675_v24 = vrot.slane %v674_v28, 4  ;;  %v353_v45 = vadd.f32 %v343_v43, %v2465_v48  ;;  %v919_v34 = vrot.slane %v2297_v10, 5  ;;  %v1699_v22 = vrot.slane %v2305_v15, 9 }
  0x76   : > { %v689_v25 = vrot.slane %v688_v63, 4  ;;  %v949_v27 = vpack.c.b16 %v942_v39, %v941_v40  ;;  %v407_v63 = vadd.s32 8, %v2112_v17  ;;  %v1020_v46 = vpack.c.b16 %v2283_v0, %v2477_v23 }
  0x77   : > { %v680_v5 = vsel %vm2348_vm2, %v675_v24, %v679_v18  ;;  %v1813_v18 = vld [vmem:[%s2894_s3 + $0x88] sm:$0xff]  ;;  %v363_v55 = vmul.f32 0.7978846, %v353_v45  ;;  %v2531_v8 = vpack.c.b16 %v2287_v4, %v2283_v0  ;;  %v2536_v17 = vpack.c.b16 %v2309_v20, %v2301_v13 }
  0x78   : > { %v694_v38 = vsel %vm2348_vm2, %v689_v25, %v693_v21  ;;  %v779_v58 = vunpack.c.l.b16 %v680_v5  ;;  %1712 = vmatmul.msk.bf16.vlgmr.msrb.gmra.mxu2 %vm803_vm0, %v949_v27  ;;  %v923_v21 = vrot.slane %v2307_v16, 5  ;;  %v411_v57 = vadd.s32 4294967295, %v407_v63 }
  0x79   : > { %v780_v62 = vunpack.c.l.b16 %v694_v38  ;;  %1897 = vtanh.f32 %v363_v55  ;;  %v1700_v10 = vrot.slane %v2319_v31, 9  ;;  %v927_v15 = vrot.slane %v2321_v35, 5 }
  0x7a   : > { %v1701_v16 = vrot.slane %v2331_v44, 9  ;;  %v2543_v23 = vsel %vm2498_vm5, %v1698_v1, %v919_v34  ;;  %v2547_v0 = vsel %vm2498_vm5, %v1699_v22, %v923_v21  ;;  %v931_v3 = vrot.slane %v2342_v47, 5  ;;  %v1808_v47 = vld [vmem:[%s2894_s3 + $0x60] sm:$0xff] }
  0x7b   : > { %v787_v50 = vpack.c.b16 %v780_v62, %v779_v58  ;;  %vm415_vm6 = vcmp.lt.s32.totalorder %v411_v57, 8  ;;  %v2552_v59 = vsel %vm2498_vm5, %v1700_v10, %v927_v15  ;;  %v2934_v31 = vmov 0   ;;  %1275 = vmatpush.bf16.msra.mxu2 %v1808_v47 }
  0x7c   : > { %v2555_v35 = vsel %vm415_vm6, 1, %v2934_v31  ;;  %v2560_v44 = vsel %vm2498_vm5, %v1701_v16, %v931_v3  ;;  %v945_v28 = vunpack.c.l.b16 %v2552_v59  ;;  %v943_v40 = vunpack.c.l.b16 %v2543_v23 }
  0x7d   : > { %1680 = vmatmul.msk.bf16.vlgmr.msra.gmra.mxu0 %vm803_vm0, %v787_v50  ;;  %v944_v24 = vunpack.c.l.b16 %v2547_v0  ;;  %v946_v25 = vunpack.c.l.b16 %v2560_v44  ;;  %v428_v5 = vperm.slane %v2555_v35, 0  ;;  %v1107_v63 = vpack.c.b16 %v2360_v29, %v780_v62  ;;  %v1806_v29 = vld [vmem:[%s2894_s3 + $0x50] sm:$0xff]  ;;  %v1812_v62 = vld [vmem:[%s2894_s3 + $0x80] sm:$0xff] }
  0x7e   : > { %1411 = vmatpush.bf16.msra.mxu0 %v1813_v18  ;;  %v1021_v22 = vpack.c.b16 %v2301_v13, %v2287_v4  ;;  %v1702_v55 = vrot.slane %v2418_v7, 9  ;;  %v935_v50 = vrot.slane %v2420_v12, 5  ;;  %v1703_v4 = vrot.slane %v2446_v41, 9  ;;  %1216 = vmatpush.bf16.msra.mxu1 %v1806_v29 }
  0x7f   : > { %v1898_v43 = vpop.eup %1897  ;;  %v2576_v27 = vpack.c.b16 %v946_v25, %v945_v28  ;;  %v2582_v58 = vpack.c.b16 %v944_v24, %v943_v40  ;;  %vm438_vm7 = vcmp.ne.s32.totalorder %v428_v5, 0  ;;  %v939_v13 = vrot.slane %v2448_v49, 5 }
  0x80   : > { %1724 = vmatmul.msk.bf16.vlgmr.msrb.gmra.mxu3 %vm803_vm0, %v1020_v46  ;;  %v383_v38 = vadd.f32 1.0, %v1898_v43  ;;  %v2610_v46 = vsel %vm2498_vm5, %v1702_v55, %v935_v50  ;;  %v1108_v43 = vpack.c.b16 %v2379_v53, %v2363_v32  ;;  %v1109_v50 = vpack.c.b16 %v2467_v51, %v2387_v2 }
  0x81   : > { %1693 = vmatmul.msk.bf16.gmra.mxu1 %vm803_vm0, %v2531_v8  ;;  %v2615_v10 = vsel %vm2498_vm5, %v1703_v4, %v939_v13  ;;  %v947_v7 = vunpack.c.l.b16 %v2610_v46  ;;  %v429_v33 = vperm.slane %v2555_v35, 1 }
  0x82   : > { %v393_v45 = vmul.f32 0.5, %v383_v38  ;;  %1412 = vmatpush.bf16.msra.mxu0 %v1812_v62  ;;  %v948_v49 = vunpack.c.l.b16 %v2615_v10  ;;  %v1022_v38 = vpack.c.b16 %v2395_v14, %v2309_v20 }
  0x83   : > { %vm439_vm8 = vcmp.ne.s32.totalorder %v429_v33, 0 }
  0x84   : > { %v403_v1 = vmul.f32 %v393_v45, %v2465_v48  ;;  %v1810_v48 = vld [vmem:[%s2894_s3 + $0x70] sm:$0xff]  ;;  %v2623_v16 = vpack.c.b16 %v948_v49, %v947_v7  ;;  %v271_v45 = vrot.slane %v2433_v30, 1 }
  0x85   : > { %1350 = vmatpush.bf16.msra.mxu3 %v1810_v48 }
  0x86   : > { %v2588_v18 = vsel %vm438_vm7, %v403_v1, 0.0  ;;  %v2641_v1 = vpack.c.b16 %v2427_v26, %v2395_v14  ;;  %v281_v32 = vperm.slane %v271_v45, 0 }
  0x87   : > { %v478_v34 = vpack.c.bf16 %v2588_v18, %v2588_v18 }
  0x88   : > { %1713 = vmatmul.msk.bf16.gmra.mxu2 %vm803_vm0, %v2582_v58  ;;  %v301_v53 = vadd.f32 %v281_v32, %v2102_v6 }
  0x89   : > { %v498_v21 = vunpack.c.l.b16 %v478_v34 }
  0x8a   : > { %v314_v14 = vadd.f32 %v2107_v11, %v301_v53  ;;  %v1181_v11 = vpack.c.b16 %v943_v40, %v942_v39 }
  0x8b   : > { %v508_v57 = vpack.c.b16 %v498_v21, %v498_v21 }
  0x8d   : > { %1736 = vmatmul.msk.bf16.vlgmr.msrb.gmra.mxu0 %vm803_vm0, %v1107_v63  ;;  %v567_v12 = vshrl.u32 %v508_v57, 16  ;;  %v570_v41 = vshll.u32 %v508_v57, 16 }
  0x8f   : > { %v569_v15 = vrot.slane %v567_v12, 7 }
  0x90   : > { %1725 = vmatmul.msk.bf16.gmra.mxu3 %vm803_vm0, %v1021_v22  ;;  %v324_v22 = vmul.f32 %v314_v14, %v314_v14 }
  0x91   : > { %1694 = vmatmul.msk.bf16.gmra.mxu1 %vm803_vm0, %v2536_v17  ;;  %v572_v3 = vor.u32 %v570_v41, %v569_v15 }
  0x92   : > { %v334_v62 = vmul.f32 %v324_v22, %v314_v14 }
  0x93   : > { %v601_v31 = vsel %vm2256_vm11, 0, %v572_v3 }
  0x94   : > { %v614_v47 = vsel %vm2262_vm12, %v601_v31, 0  ;;  %v344_v55 = vmul.f32 0.044715, %v334_v62 }
  0x95   : > { %v2633_v5 = vunpack.c.l.b16 %v614_v47  ;;  %v1089_v20 = vunpack.c.h.b16 %v614_v47  ;;  %v1182_v47 = vpack.c.b16 %v945_v28, %v944_v24 }
  0x96   : > { %v354_v13 = vadd.f32 %v344_v55, %v314_v14 }
  0x97   : > { %v2645_v63 = vpack.c.b16 %v2633_v5, %v2633_v5  ;;  %v1091_v21 = vpack.c.b16 %v1089_v20, %v1089_v20  ;;  %v1023_v57 = vpack.c.b16 %v2633_v5, %v2427_v26 }
  0x98   : > { %1714 = vmatmul.msk.bf16.gmra.mxu2 %vm803_vm0, %v2576_v27  ;;  %v364_v46 = vmul.f32 0.7978846, %v354_v13 }
  0x99   : > { %v1093_v30 = vshrl.u32 %v2645_v63, 16  ;;  %v1096_v34 = vshll.u32 %v2645_v63, 16  ;;  %v1102_v4 = vshll.u32 %v1091_v21, 16  ;;  %v1740_v28 = vrot.slane %v2645_v63, 9 }
  0x9a   : > { %1899 = vtanh.f32 %v364_v46  ;;  %v1178_v36 = vrot.slane %v1091_v21, 5 }
  0x9b   : > { %v1095_v48 = vrot.slane %v1093_v30, 4  ;;  %v1098_v29 = vrot.slane %v1096_v34, 5  ;;  %v1104_v41 = vrot.slane %v1102_v4, 5 }
  0x9c   : > { %v1179_v42 = vsel %vm2498_vm5, %v1740_v28, %v1178_v36 }
  0x9d   : > { %1737 = vmatmul.msk.bf16.gmra.mxu0 %vm803_vm0, %v1108_v43  ;;  %v1099_v6 = vor.u32 %v1098_v29, %v1095_v48  ;;  %v1183_v43 = vpack.c.b16 %v947_v7, %v946_v25 }
  0x9f   : > { %v1100_v12 = vrot.slane %v1099_v6, 4 }
  0xa0   : > { %1726 = vmatmul.msk.bf16.gmra.mxu3 %vm803_vm0, %v1022_v38  ;;  %v1900_v51 = vpop.eup %1899 }
  0xa1   : > { %1695 = vmatmul.msk.bf16.gmra.mxu1 %vm803_vm0, %v2641_v1  ;;  %v1105_v2 = vsel %vm2348_vm2, %v1100_v12, %v1104_v41  ;;  %v384_v15 = vadd.f32 1.0, %v1900_v51 }
  0xa2   : > { %v1106_v26 = vunpack.c.l.b16 %v1105_v2 }
  0xa3   : > { %v394_v3 = vmul.f32 0.5, %v384_v15 }
  0xa4   : > { %v1110_v39 = vpack.c.b16 %v1106_v26, %v2475_v37 }
  0xa5   : > { %v404_v23 = vmul.f32 %v394_v3, %v314_v14 }
  0xa7   : > { %v469_v40 = vsel %vm439_vm8, %v404_v23, 0.0 }
  0xa8   : > { %1715 = vmatmul.msk.bf16.gmra.mxu2 %vm803_vm0, %v2623_v16  ;;  %v479_v31 = vpack.c.bf16 %v469_v40, %v469_v40 }
  0xaa   : > { %v499_v35 = vunpack.c.l.b16 %v479_v31 }
  0xac   : > { %v509_v37 = vpack.c.b16 %v499_v35, %v499_v35 }
  0xad   : > { %1738 = vmatmul.msk.bf16.gmra.mxu0 %vm803_vm0, %v1109_v50 }
  0xae   : > { %v577_v45 = vshll.u32 %v509_v37, 16 }
  0xb0   : > { %1727 = vmatmul.msk.bf16.gmra.mxu3 %vm803_vm0, %v1023_v57 }
  0xb1   : > { %1749 = vmatmul.msk.bf16.vlgmr.msra.gmra.mxu1 %vm803_vm0, %v1181_v11 }
  0xb8   : > { %1761 = vmatmul.msk.bf16.vlgmr.msra.gmra.mxu2 %vm803_vm0, %v2531_v8  ;;  %v574_v8 = vshrl.u32 %v509_v37, 16 }
  0xba   : > { %v576_v38 = vrot.slane %v574_v8, 7 }
  0xbc   : > { %v579_v32 = vor.u32 %v577_v45, %v576_v38 }
  0xbd   : > { %1739 = vmatmul.msk.bf16.gmra.mxu0 %vm803_vm0, %v1110_v39 }
  0xbe   : > { %v602_v0 = vsel %vm2256_vm11, 0, %v579_v32 }
  0xbf   : > { %v615_v59 = vsel %vm2262_vm12, %v602_v0, 0 }
  0xc0   : > { %1773 = vmatmul.msk.bf16.vlgmr.msra.gmra.mxu3 %vm803_vm0, %v2373_v9  ;;  %v1251_v9 = vunpack.c.l.b16 %v615_v59  ;;  %v1309_v24 = vunpack.c.h.b16 %v615_v59 }
  0xc1   : > { %1750 = vmatmul.msk.bf16.gmra.mxu1 %vm803_vm0, %v1182_v47 }
  0xc2   : > { %v1310_v44 = vpack.c.b16 %v1251_v9, %v1251_v9  ;;  %v1252_v21 = vpack.c.b16 %v1251_v9, %v2633_v5 }
  0xc4   : > { %v1313_v25 = vshrl.u32 %v1310_v44, 16  ;;  %v1316_v7 = vshll.u32 %v1310_v44, 16 }
  0xc6   : > { %v1315_v53 = vrot.slane %v1313_v25, 4  ;;  %v1318_v20 = vrot.slane %v1316_v7, 5 }
  0xc8   : > { %1762 = vmatmul.msk.bf16.gmra.mxu2 %vm803_vm0, %v2536_v17  ;;  %v1180_v17 = vunpack.c.l.b16 %v1179_v42  ;;  %v1319_v34 = vor.u32 %v1318_v20, %v1315_v53 }
  0xca   : > { %v1184_v63 = vpack.c.b16 %v1180_v17, %v948_v49  ;;  %v1777_v49 = vrot.slane %v1310_v44, 9 }
  0xcd   : > { %1786 = vmatmul.msk.bf16.vlgmr.msra.gmra.mxu0 %vm803_vm0, %v2582_v58  ;;  %v1311_v58 = vpack.c.b16 %v1309_v24, %v1309_v24 }
  0xcf   : > { %v1322_v30 = vshll.u32 %v1311_v58, 16 }
  0xd0   : > { %1774 = vmatmul.msk.bf16.gmra.mxu3 %vm803_vm0, %v2401_v61 }
  0xd1   : > { %1751 = vmatmul.msk.bf16.gmra.mxu1 %vm803_vm0, %v1183_v43  ;;  %v1324_v14 = vrot.slane %v1322_v30, 5 }
  0xd8   : > { %1763 = vmatmul.msk.bf16.gmra.mxu2 %vm803_vm0, %v2641_v1  ;;  %v2699_v61 = vpop.f32.mrf.mxu1  ;;  %v1320_v1 = vrot.slane %v1319_v34, 4 }
  0xda   : > { %v1325_v48 = vsel %vm2348_vm2, %v1320_v1, %v1324_v14 }
  0xdd   : > { %1787 = vmatmul.msk.bf16.gmra.mxu0 %vm803_vm0, %v2576_v27  ;;  %v1326_v27 = vunpack.c.l.b16 %v1325_v48 }
  0xdf   : > { %v1327_v10 = vpack.c.b16 %v1326_v27, %v1106_v26 }
  0xe0   : > { %1775 = vmatmul.msk.bf16.gmra.mxu3 %vm803_vm0, %v2489_v19  ;;  %v2708_v22 = vpop.f32.mrf.mxu1  ;;  %v1386_v19 = vrot.slane %v1311_v58, 5 }
  0xe1   : > { %1752 = vmatmul.msk.bf16.gmra.mxu1 %vm803_vm0, %v1184_v63 }
  0xe2   : > { %v2713_v29 = vpop.f32.mrf.mxu2  ;;  %v1387_v5 = vsel %vm2498_vm5, %v1777_v49, %v1386_v19 }
  0xe3   : > { %v1388_v50 = vunpack.c.l.b16 %v1387_v5  ;;  %v2764_v5 = vld [vmem:[%s2895_s4] ss:$0 sm:$0xff] }
  0xe5   : > { %v1389_v4 = vpack.c.b16 %v1388_v50, %v1180_v17 }
  0xe8   : > { %1764 = vmatmul.msk.bf16.gmra.mxu2 %vm803_vm0, %v1252_v21 }
  0xea   : > { %v2721_v55 = vpop.f32.mrf.mxu2 }
  0xed   : > { %1788 = vmatmul.msk.bf16.gmra.mxu0 %vm803_vm0, %v2623_v16 }
  0xee   : > { %v882_v62 = vpop.f32.mrf.mxu1 }
  0xf0   : > { %1776 = vmatmul.msk.bf16.gmra.mxu3 %vm803_vm0, %v1327_v10 }
  0xf3   : > { %v2723_v52 = vpop.f32.mrf.mxu3 }
  0xf6   : > { %v884_v6 = vpop.f32.mrf.mxu1 }
  0xfa   : > { %v825_v13 = vpop.f32.mrf.mxu0 }
  0xfb   : > { %v2725_v57 = vpop.f32.mrf.mxu3  ;;  %v986_v46 = vpop.f32.mrf.mxu2  ;;  %v883_v36 = vadd.f32 %v882_v62, %v825_v13 }
  0xfd   : > { %1789 = vmatmul.msk.bf16.gmra.mxu0 %vm803_vm0, %v1389_v4  ;;  %v1006_v24 = vadd.f32 %v986_v46, %v883_v36 }
  0xfe   : > { %v887_v16 = vpop.f32.mrf.mxu1 }
  0xff   : > { %v888_v10 = vadd.f32 %v887_v16, %v2699_v61 }
 0x102   : > { %v827_v11 = vpop.f32.mrf.mxu0 }
 0x103   : > { %v1057_v12 = vpop.f32.mrf.mxu3  ;;  %v988_v41 = vpop.f32.mrf.mxu2  ;;  %v885_v53 = vadd.f32 %v884_v6, %v827_v11 }
 0x104   : > { %v1077_v42 = vadd.f32 %v1057_v12, %v1006_v24 }
 0x105   : > { %v1007_v20 = vadd.f32 %v988_v41, %v885_v53 }
 0x106   : > { %v889_v2 = vpop.f32.mrf.mxu1 }
 0x107   : > { %v890_v41 = vadd.f32 %v889_v2, %v2708_v22 }
 0x10a   : > { %v1144_v56 = vpop.f32.mrf.mxu0 }
 0x10b   : > { %v1059_v51 = vpop.f32.mrf.mxu3  ;;  %v991_v26 = vpop.f32.mrf.mxu2  ;;  %v1164_v63 = vadd.f32 %v1144_v56, %v1077_v42 }
 0x10c   : > { %v1078_v1 = vadd.f32 %v1059_v51, %v1007_v20  ;;  %v1008_v19 = vadd.f32 %v991_v26, %v888_v10 }
 0x10e   : > { %v2728_v15 = vpop.f32.mrf.mxu1 }
 0x10f   : > { %v893_v20 = vadd.f32 %v2728_v15, %v2713_v29 }
 0x112   : > { %v1146_v3 = vpop.f32.mrf.mxu0 }
 0x113   : > { %v1062_v33 = vpop.f32.mrf.mxu3  ;;  %v993_v39 = vpop.f32.mrf.mxu2  ;;  %v1165_v62 = vadd.f32 %v1146_v3, %v1078_v1 }
 0x114   : > { %v1079_v4 = vadd.f32 %v1062_v33, %v1008_v19  ;;  %v1009_v16 = vadd.f32 %v993_v39, %v890_v41 }
 0x116   : > { %v2730_v23 = vpop.f32.mrf.mxu1 }
 0x11a   : > { %v1149_v40 = vpop.f32.mrf.mxu0 }
 0x11b   : > { %v1064_v31 = vpop.f32.mrf.mxu3  ;;  %v996_v47 = vpop.f32.mrf.mxu2  ;;  %v1166_v3 = vadd.f32 %v1149_v40, %v1079_v4 }
 0x11c   : > { %v1080_v42 = vadd.f32 %v1064_v31, %v1009_v16  ;;  %v1010_v39 = vadd.f32 %v996_v47, %v893_v20 }
 0x11e   : > { %v2732_v43 = vpop.f32.mrf.mxu1 }
 0x122   : > { %v2734_v35 = vpop.f32.mrf.mxu0 }
 0x123   : > { %v2736_v37 = vpop.f32.mrf.mxu3  ;;  %v2738_v8 = vpop.f32.mrf.mxu2  ;;  %v1167_v31 = vadd.f32 %v2734_v35, %v1080_v42 }
 0x124   : > { %v1081_v29 = vadd.f32 %v2736_v37, %v1010_v39 }
 0x126   : > { %v2740_v38 = vpop.f32.mrf.mxu1 }
 0x12a   : > { %v2742_v45 = vpop.f32.mrf.mxu0 }
 0x12b   : > { %v2744_v32 = vpop.f32.mrf.mxu3  ;;  %v2746_v0 = vpop.f32.mrf.mxu2 }
 0x12e   : > { %v1218_v59 = vpop.f32.mrf.mxu1 }
 0x12f   : > { %v1238_v30 = vadd.f32 %v1218_v59, %v1164_v63 }
 0x132   : > { %v2748_v9 = vpop.f32.mrf.mxu0 }
 0x133   : > { %v2750_v44 = vpop.f32.mrf.mxu3  ;;  %v2752_v28 = vpop.f32.mrf.mxu2 }
 0x136   : > { %v1220_v7 = vpop.f32.mrf.mxu1 }
 0x137   : > { %v1239_v50 = vadd.f32 %v1220_v7, %v1165_v62 }
 0x13a   : > { %v2754_v25 = vpop.f32.mrf.mxu0 }
 0x13b   : > { %v2756_v17 = vpop.f32.mrf.mxu3  ;;  %v1277_v58 = vpop.f32.mrf.mxu2 }
 0x13c   : > { %v1297_v14 = vadd.f32 %v1277_v58, %v1238_v30 }
 0x13e   : > { %v1223_v27 = vpop.f32.mrf.mxu1 }
 0x13f   : > { %v1240_v36 = vadd.f32 %v1223_v27, %v1166_v3 }
 0x142   : > { %v2758_v34 = vpop.f32.mrf.mxu0 }
 0x143   : > { %v1352_v21 = vpop.f32.mrf.mxu3  ;;  %v1279_v48 = vpop.f32.mrf.mxu2 }
 0x144   : > { %v1372_v49 = vadd.f32 %v1352_v21, %v1297_v14  ;;  %v1298_v46 = vadd.f32 %v1279_v48, %v1239_v50 }
 0x146   : > { %v1225_v61 = vpop.f32.mrf.mxu1 }
 0x147   : > { %v1241_v48 = vadd.f32 %v1225_v61, %v1167_v31 }
 0x14a   : > { %v1414_v6 = vpop.f32.mrf.mxu0 }
 0x14b   : > { %v1434_v13 = vadd.f32 %v1414_v6, %v1372_v49  ;;  %v1354_v11 = vpop.f32.mrf.mxu3  ;;  %v1282_v12 = vpop.f32.mrf.mxu2  ;;  %v895_v49 = vadd.f32 %v2730_v23, %v2721_v55 }
 0x14c   : > { %v1373_v26 = vadd.f32 %v1354_v11, %v1298_v46  ;;  %v1299_v33 = vadd.f32 %v1282_v12, %v1240_v36  ;;  %v1168_v11 = vadd.f32 %v2742_v45, %v1081_v29  ;;  %v898_v36 = vadd.f32 %v2732_v43, %v2723_v52 }
 0x14d   : > { %v1446_v56 = vadd.f32 %v2764_v5, %v1434_v13  ;;  %v1011_v6 = vadd.f32 %v2738_v8, %v895_v49 }
 0x14e   : > { %v1228_v14 = vpop.f32.mrf.mxu1 }
 0x14f   : > { %v1454_v51 = vmul.f32 %v1446_v56, %v1446_v56  ;;  %v1242_v23 = vadd.f32 %v1228_v14, %v1168_v11  ;;  %v1082_v8 = vadd.f32 %v2744_v32, %v1011_v6  ;;  %v1012_v32 = vadd.f32 %v2746_v0, %v898_v36 }
 0x151   : > { %v1462_v59 = vmul.f32 %v1454_v51, %v1446_v56  ;;  %v1169_v43 = vadd.f32 %v2748_v9, %v1082_v8  ;;  %v900_v9 = vadd.f32 %v2740_v38, %v2725_v57 }
 0x152   : > { %v1416_v24 = vpop.f32.mrf.mxu0 }
 0x153   : > { %v1470_v7 = vmul.f32 0.044715, %v1462_v59  ;;  %v1435_v58 = vadd.f32 %v1416_v24, %v1373_v26  ;;  %v1357_v53 = vpop.f32.mrf.mxu3  ;;  %v1284_v63 = vpop.f32.mrf.mxu2  ;;  %v1526_v24 = vmul.f32 0.3, %v2393_v60 }
 0x154   : > { %v1374_v1 = vadd.f32 %v1357_v53, %v1299_v33  ;;  %v1300_v19 = vadd.f32 %v1284_v63, %v1241_v48 }
 0x155   : > { %v1478_v22 = vadd.f32 %v1470_v7, %v1446_v56  ;;  %v2771_v2 = vadd.f32 %v2764_v5, %v1435_v58 }
 0x156   : > { %v1230_v16 = vpop.f32.mrf.mxu1 }
 0x157   : > { %v1486_v30 = vmul.f32 0.7978846, %v1478_v22  ;;  %v1455_v40 = vmul.f32 %v2771_v2, %v2771_v2  ;;  %v1243_v39 = vadd.f32 %v1230_v16, %v1169_v43  ;;  %v2936_v43 = vld [vmem:[#allocation6_spill] sm:$0xff] }
 0x159   : > { %1901 = vtanh.f32 %v1486_v30  ;;  %v1463_v21 = vmul.f32 %v1455_v40, %v2771_v2  ;;  %v1083_v40 = vadd.f32 %v2750_v44, %v1012_v32  ;;  %v1013_v44 = vadd.f32 %v2752_v28, %v900_v9 }
 0x15a   : > { %v1419_v27 = vpop.f32.mrf.mxu0 }
 0x15b   : > { %v1471_v15 = vmul.f32 0.044715, %v1463_v21  ;;  %v1436_v10 = vadd.f32 %v1419_v27, %v1374_v1  ;;  %v1359_v47 = vpop.f32.mrf.mxu3  ;;  %v1287_v62 = vpop.f32.mrf.mxu2  ;;  %v1527_v27 = vmul.f32 0.3, %v2214_v54 }
 0x15c   : > { %v1375_v46 = vadd.f32 %v1359_v47, %v1300_v19  ;;  %v1301_v3 = vadd.f32 %v1287_v62, %v1242_v23  ;;  %v2935_v23 = vld [vmem:[#allocation5_spill] sm:$0xff] }
 0x15d   : > { %v1479_v50 = vadd.f32 %v1471_v15, %v2771_v2  ;;  %v2782_v35 = vadd.f32 %v2764_v5, %v1436_v10 }
 0x15e   : > { %v1233_v29 = vpop.f32.mrf.mxu1 }
 0x15f   : > { %v1902_v4 = vpop.eup %1901  ;;  %v1487_v13 = vmul.f32 0.7978846, %v1479_v50  ;;  %v1456_v37 = vmul.f32 %v2782_v35, %v2782_v35 }
 0x160   : > { %v1502_v12 = vadd.f32 1.0, %v1902_v4 }
 0x161   : > { %1903 = vtanh.f32 %v1487_v13  ;;  %v1464_v55 = vmul.f32 %v1456_v37, %v2782_v35  ;;  %v1084_v37 = vadd.f32 %v2756_v17, %v1013_v44 }
 0x162   : > { %v1510_v41 = vmul.f32 0.5, %v1502_v12  ;;  %v1421_v61 = vpop.f32.mrf.mxu0 }
 0x163   : > { %v1472_v51 = vmul.f32 0.044715, %v1464_v55  ;;  %v1437_v26 = vadd.f32 %v1421_v61, %v1375_v46  ;;  %v1362_v59 = vpop.f32.mrf.mxu3  ;;  %v1289_v42 = vpop.f32.mrf.mxu2  ;;  %v1171_v17 = vadd.f32 %v2758_v34, %v1084_v37 }
 0x164   : > { %v1518_v45 = vmul.f32 %v1510_v41, %v1446_v56  ;;  %v1376_v52 = vadd.f32 %v1362_v59, %v1301_v3  ;;  %v1302_v14 = vadd.f32 %v1289_v42, %v1243_v39  ;;  %v1528_v41 = vmul.f32 0.3, %v2935_v23 }
 0x165   : > { %v1480_v7 = vadd.f32 %v1472_v51, %v2782_v35  ;;  %v2798_v58 = vadd.f32 %v2764_v5, %v1437_v26 }
 0x166   : > { %v1534_v33 = vmul.f32 0.7, %v1518_v45  ;;  %v1235_v51 = vpop.f32.mrf.mxu1 }
 0x167   : > { %v1904_v53 = vpop.eup %1903  ;;  %v1488_v20 = vmul.f32 0.7978846, %v1480_v7  ;;  %v1457_v63 = vmul.f32 %v2798_v58, %v2798_v58  ;;  %v1245_v7 = vadd.f32 %v1235_v51, %v1171_v17 }
 0x168   : > { %v1542_v56 = vadd.f32 %v1534_v33, %v1526_v24  ;;  %v1503_v22 = vadd.f32 1.0, %v1904_v53 }
 0x169   : > { %1905 = vtanh.f32 %v1488_v20  ;;  %v1465_v60 = vmul.f32 %v1457_v63, %v2798_v58 }
 0x16a   : > { %1550 = vst.msk [vmem:[%s2805_s13] sm:$0xff] %vm803_vm0, %v1542_v56  ;;  %v1511_v0 = vmul.f32 0.5, %v1503_v22  ;;  %v1424_v30 = vpop.f32.mrf.mxu0  ;;  %v1529_v56 = vmul.f32 0.3, %v2936_v43 }
 0x16b   : > { %v1473_v1 = vmul.f32 0.044715, %v1465_v60  ;;  %v1438_v31 = vadd.f32 %v1424_v30, %v1376_v52  ;;  %v1364_v21 = vpop.f32.mrf.mxu3  ;;  %v1292_v47 = vpop.f32.mrf.mxu2 }
 0x16c   : > { %v1519_v48 = vmul.f32 %v1511_v0, %v2771_v2  ;;  %v1377_v38 = vadd.f32 %v1364_v21, %v1302_v14  ;;  %v1170_v2 = vadd.f32 %v2754_v25, %v1083_v40 }
 0x16d   : > { %v1481_v15 = vadd.f32 %v1473_v1, %v2798_v58  ;;  %v2816_v10 = vadd.f32 %v2764_v5, %v1438_v31 }
 0x16e   : > { %v1535_v19 = vmul.f32 0.7, %v1519_v48  ;;  %v1244_v4 = vadd.f32 %v1233_v29, %v1170_v2 }
 0x16f   : > { %v1906_v49 = vpop.eup %1905  ;;  %v1489_v62 = vmul.f32 0.7978846, %v1481_v15  ;;  %v1458_v57 = vmul.f32 %v2816_v10, %v2816_v10  ;;  %v2937_v15 = vld [vmem:[#allocation7_spill] sm:$0xff] }
 0x170   : > { %v1543_v54 = vadd.f32 %v1535_v19, %v1527_v27  ;;  %v1504_v50 = vadd.f32 1.0, %v1906_v49  ;;  %v1303_v12 = vadd.f32 %v1292_v47, %v1244_v4  ;;  %v1530_v44 = vmul.f32 0.3, %v2937_v15 }
 0x171   : > { %1907 = vtanh.f32 %v1489_v62  ;;  %v1466_v6 = vmul.f32 %v1458_v57, %v2816_v10 }
 0x172   : > { %1551 = vst.msk [vmem:[%s2805_s13 + $0x8] sm:$0xff] %vm803_vm0, %v1543_v54  ;;  %v1512_v13 = vmul.f32 0.5, %v1504_v50  ;;  %v1426_v28 = vpop.f32.mrf.mxu0 }
 0x173   : > { %v1474_v46 = vmul.f32 0.044715, %v1466_v6  ;;  %v1439_v11 = vadd.f32 %v1426_v28, %v1377_v38  ;;  %v1367_v25 = vpop.f32.mrf.mxu3  ;;  %v1294_v42 = vpop.f32.mrf.mxu2 }
 0x174   : > { %v1520_v55 = vmul.f32 %v1512_v13, %v2782_v35  ;;  %v1378_v36 = vadd.f32 %v1367_v25, %v1303_v12  ;;  %v1304_v63 = vadd.f32 %v1294_v42, %v1245_v7  ;;  %v2938_v13 = vld [vmem:[#allocation8_spill] sm:$0xff]  ;;  %v2939_v25 = vld [vmem:[#allocation9_spill] sm:$0xff] }
 0x175   : > { %v1482_v61 = vadd.f32 %v1474_v46, %v2816_v10  ;;  %v1451_v16 = vadd.f32 %v2764_v5, %v1439_v11  ;;  %v1531_v28 = vmul.f32 0.3, %v2938_v13 }
 0x176   : > { %v1536_v8 = vmul.f32 0.7, %v1520_v55 }
 0x177   : > { %v1908_v26 = vpop.eup %1907  ;;  %v1490_v3 = vmul.f32 0.7978846, %v1482_v61  ;;  %v1459_v59 = vmul.f32 %v1451_v16, %v1451_v16  ;;  %v1532_v61 = vmul.f32 0.3, %v2939_v25 }
 0x178   : > { %v1544_v45 = vadd.f32 %v1536_v8, %v1528_v41  ;;  %v1505_v24 = vadd.f32 1.0, %v1908_v26 }
 0x179   : > { %1909 = vtanh.f32 %v1490_v3  ;;  %v1467_v35 = vmul.f32 %v1459_v59, %v1451_v16 }
 0x17a   : > { %1552 = vst.msk [vmem:[%s2805_s13 + $0x10] sm:$0xff] %vm803_vm0, %v1544_v45  ;;  %v1513_v32 = vmul.f32 0.5, %v1505_v24  ;;  %v1429_v33 = vpop.f32.mrf.mxu0 }
 0x17b   : > { %v1475_v53 = vmul.f32 0.044715, %v1467_v35  ;;  %v1440_v20 = vadd.f32 %v1429_v33, %v1378_v36  ;;  %v1369_v39 = vpop.f32.mrf.mxu3  ;;  %v1533_v36 = vmul.f32 0.3, %v2588_v18 }
 0x17c   : > { %v1521_v52 = vmul.f32 %v1513_v32, %v2798_v58  ;;  %v1379_v1 = vadd.f32 %v1369_v39, %v1304_v63 }
 0x17d   : > { %v1483_v22 = vadd.f32 %v1475_v53, %v1451_v16  ;;  %v1452_v34 = vadd.f32 %v2764_v5, %v1440_v20 }
 0x17e   : > { %v1537_v60 = vmul.f32 0.7, %v1521_v52 }
 0x17f   : > { %v1910_v0 = vpop.eup %1909  ;;  %v1491_v30 = vmul.f32 0.7978846, %v1483_v22  ;;  %v1460_v40 = vmul.f32 %v1452_v34, %v1452_v34 }
 0x180   : > { %v1545_v31 = vadd.f32 %v1537_v60, %v1529_v56  ;;  %v1506_v14 = vadd.f32 1.0, %v1910_v0 }
 0x181   : > { %1911 = vtanh.f32 %v1491_v30  ;;  %v1468_v21 = vmul.f32 %v1460_v40, %v1452_v34 }
 0x182   : > { %1553 = vst.msk [vmem:[%s2805_s13 + $0x18] sm:$0xff] %vm803_vm0, %v1545_v31  ;;  %v1514_v9 = vmul.f32 0.5, %v1506_v14  ;;  %v1431_v58 = vpop.f32.mrf.mxu0 }
 0x183   : > { %v1476_v48 = vmul.f32 0.044715, %v1468_v21  ;;  %v1441_v27 = vadd.f32 %v1431_v58, %v1379_v1 }
 0x184   : > { %v1522_v29 = vmul.f32 %v1514_v9, %v2816_v10 }
 0x185   : > { %v1484_v19 = vadd.f32 %v1476_v48, %v1452_v34  ;;  %v1453_v47 = vadd.f32 %v2764_v5, %v1441_v27 }
 0x186   : > { %v1538_v49 = vmul.f32 0.7, %v1522_v29 }
 0x187   : > { %v1912_v62 = vpop.eup %1911  ;;  %v1492_v57 = vmul.f32 0.7978846, %v1484_v19  ;;  %v1461_v38 = vmul.f32 %v1453_v47, %v1453_v47 }
 0x188   : > { %v1546_v2 = vadd.f32 %v1538_v49, %v1530_v44  ;;  %v1507_v54 = vadd.f32 1.0, %v1912_v62 }
 0x189   : > { %1913 = vtanh.f32 %v1492_v57  ;;  %v1469_v50 = vmul.f32 %v1461_v38, %v1453_v47 }
 0x18a   : > { %1554 = vst.msk [vmem:[%s2805_s13 + $0x20] sm:$0xff] %vm803_vm0, %v1546_v2  ;;  %v1515_v6 = vmul.f32 0.5, %v1507_v54 }
 0x18b   : > { %v1477_v4 = vmul.f32 0.044715, %v1469_v50 }
 0x18c   : > { %v1523_v10 = vmul.f32 %v1515_v6, %v1451_v16 }
 0x18d   : > { %v1485_v37 = vadd.f32 %v1477_v4, %v1453_v47 }
 0x18e   : > { %v1539_v46 = vmul.f32 0.7, %v1523_v10 }
 0x18f   : > { %v1914_v5 = vpop.eup %1913  ;;  %v1493_v11 = vmul.f32 0.7978846, %v1485_v37 }
 0x190   : > { %v1547_v12 = vadd.f32 %v1539_v46, %v1531_v28  ;;  %v1508_v55 = vadd.f32 1.0, %v1914_v5 }
 0x191   : > { %1915 = vtanh.f32 %v1493_v11 }
 0x192   : > { %1555 = vst.msk [vmem:[%s2805_s13 + $0x28] sm:$0xff] %vm803_vm0, %v1547_v12  ;;  %v1516_v23 = vmul.f32 0.5, %v1508_v55 }
 0x194   : > { %v1524_v41 = vmul.f32 %v1516_v23, %v1452_v34 }
 0x196   : > { %v1540_v8 = vmul.f32 0.7, %v1524_v41 }
 0x197   : > { %v1916_v16 = vpop.eup %1915 }
 0x198   : > { %v1548_v51 = vadd.f32 %v1540_v8, %v1532_v61  ;;  %v1509_v26 = vadd.f32 1.0, %v1916_v16 }
 0x19a   : > { %1556 = vst.msk [vmem:[%s2805_s13 + $0x30] sm:$0xff] %vm803_vm0, %v1548_v51  ;;  %v1517_v3 = vmul.f32 0.5, %v1509_v26 }
 0x19c   : > { %v1525_v59 = vmul.f32 %v1517_v3, %v1453_v47 }
 0x19e   : > { %v1541_v17 = vmul.f32 0.7, %v1525_v59 }
 0x1a0   : > { %v1549_v45 = vadd.f32 %v1541_v17, %v1533_v36 }
 0x1a2   : > { %1557 = vst.msk [vmem:[%s2805_s13 + $0x38] sm:$0xff] %vm803_vm0, %v1549_v45 }
 0x1a3   : > { %1944 = shalt.err (!%p1941_p5)
}
 0x1a4   : > { %s1998_s11 = smov 128   ;;  %s1999_s13 = smov 8  }
 0x1a5   : > { %1821 = dma.vmem_to_hbm [thread:$0]  (%p2070_p4), %s1574_s25, 1024, %s1576_s27, %s1559_s21, %s1998_s11, %s1998_s11, %s1999_s13  }
 0x1a6 PF: > { %p1827_p6 = scmp.ge.s32.totalorder %s1995_s23, 2  ;;  %s1590_s14 = sand.u32 1, %s1975_s18  }
 0x1a7   : > { %s1591_s15 = scalar_lea.sflag [#allocation3], %s1590_s14 }
 0x1a8   : > { %p1824_p7 = pnand %p1827_p6, %p2077_p8 }
 0x1aa   : > { %p1825_p9 = pneg %p1824_p7 }
 0x1ac   : > { %1970 = dma.done.wait (%p1825_p9), %s1591_s15, 1024  }
 0x1ad   : > { %1972 = vsyncadd (%p1825_p9), %s1591_s15, 4294966272  ;;  %s18_s23 = sadd.s32 1, %s1995_s23   ;;  %s2940_s18 = smov %s1979_s19 }
 0x1ae   : > { %p15_p10 = scmp.ge.s32.totalorder %s18_s23, 4   ;;  %s2941_s19 = smov %s1983_s20 }
 0x1af   : > { %s2942_s20 = smov %s2083_s6  ;;  %s2943_s21 = smov %s1991_s22 }
 0x1b0   : > { %s2944_s22 = smov %s2946_s26  ;;  %17 = sbr.rel (!%p15_p10) target bundleno = 4 (0x4), region = 79 }
 0x1b5   :  { %1597 = vsyncpa [#allocation3], 1 }
 0x1b6   :  { %1599 = vsyncpa [#allocation3 + $0x1], 1 }

</bundles_post_ra>
